<compile_context>
chip_gen: v5e
topology: v5e:2x2
jax: 0.10.0
libtpu: 0.0.40
codegen_flags: <defaults>
</compile_context>

<pallas_src>
import math

import jax
import jax.numpy as jnp
import numpy as np
from jax import lax
from jax.experimental import pallas as pl
from jax.experimental.pallas import tpu as pltpu


def _make_kernel(layers: int, head_dim: int, mem_dim: int, n: int,
                 sb: int, n_sub: int):
    """Builds the batch-blocked GCN kernel (all sizes static)."""
    m_sub = sb * n                                # token rows per sub-batch
    k_final = mem_dim + head_dim * (layers - 1)   # width of the comb slab
    w_off, off = [], 0
    for l in range(layers):
        w_off.append(off)
        off += mem_dim + head_dim * l

    def kernel(adj_ref, x_ref, w_ref, b_ref, wl_ref, bl_ref, out_ref,
               comb_ref, gcat_ref):
        wl = wl_ref[...]                          # (mem_dim, mem_dim)
        bl = bl_ref[...]                          # (1, mem_dim)

        # Loop-invariant index grids for the block-diagonal (A + I) operator.
        # Token-major row order: row r = token*sb + sample.
        ridx = lax.broadcasted_iota(jnp.int32, (m_sub, m_sub), 0)
        cidx = lax.broadcasted_iota(jnp.int32, (m_sub, m_sub), 1)
        same_sample = (ridx % sb) == (cidx % sb)
        eye_f = (ridx == cidx).astype(jnp.float32)

        def sub_body(s, carry):
            row0 = s * sb if isinstance(s, int) else pl.multiple_of(s * sb, sb)
            adj_chunk = adj_ref[pl.ds(row0, sb), :].astype(jnp.float32)  # (sb, n*n)
            x_chunk = x_ref[pl.ds(row0, sb), :].astype(jnp.float32)      # (sb, n*D)

            # Token-major views via static contiguous slices + axis-0 concat.
            adj2 = jnp.concatenate(
                [adj_chunk[:, p * n:(p + 1) * n] for p in range(n)], axis=0)
            x_sub = jnp.concatenate(
                [x_chunk[:, p * mem_dim:(p + 1) * mem_dim] for p in range(n)],
                axis=0)                                                  # (m_sub, D)

            # Block-diagonal A (+ I): one MXU-wide operand instead of `sb`
            # tiny per-sample (n, n) @ (n, K) matmuls.
            t_mat = jnp.concatenate(
                [jnp.broadcast_to(adj2[:, q:q + 1], (m_sub, sb))
                 for q in range(n)], axis=1)          # T[r, c] = adj2[r, c // sb]
            a_pi = jnp.where(same_sample, t_mat, 0.0) + eye_f

            # denom = adj.sum(2) + 1; EUP reciprocal + one Newton step.
            denom = jnp.sum(adj2, axis=1, keepdims=True) + 1.0
            r = pl.reciprocal(denom, approx=True)
            inv_denom = r * (2.0 - denom * r)

            # comb = (A + I) @ outputs, kept in a fixed-width VMEM slab.
            comb_ref[:, :mem_dim] = jnp.dot(
                a_pi, x_sub, preferred_element_type=jnp.float32)

            for l in range(layers):
                k_l = mem_dim + head_dim * l
                w_l = w_ref[w_off[l]:w_off[l] + k_l, :]        # (k_l, hd)
                b_l = b_ref[l:l + 1, :]                        # (1, hd)
                s_l = jnp.dot(comb_ref[:, :k_l], w_l,
                              preferred_element_type=jnp.float32)
                # W_l(Ax) + b + W_l(outputs) + b == comb @ W_l + 2*b
                g = jnp.maximum((s_l + 2.0 * b_l) * inv_denom, 0.0)
                gcat_ref[:, l * head_dim:(l + 1) * head_dim] = g
                if l < layers - 1:
                    comb_ref[:, k_l:k_l + head_dim] = jnp.dot(
                        a_pi, g, preferred_element_type=jnp.float32)

            # out = Linear(cat(g_list) + x): one full-K matmul.
            gsum = gcat_ref[...] + x_sub
            res = jnp.dot(gsum, wl, preferred_element_type=jnp.float32) + bl

            # Re-pack token-major rows into the lane-dense (sb, n*D) block:
            # static row slices + minor-axis concat -> one full-width store.
            dense = jnp.concatenate(
                [res[p * sb:(p + 1) * sb, :] for p in range(n)], axis=1)
            out_ref[pl.ds(row0, sb), :] = dense.astype(out_ref.dtype)
            return carry

        if n_sub == 1:
            sub_body(0, 0)
        else:
            lax.fori_loop(0, n_sub, sub_body, 0)

    return kernel


def graph_conv_layer(adj, x, weights, biases, w_lin, b_lin, *, layers,
                     sb=None, n_sub=None):
    """Pallas wrapper. adj: (B, N, N), x: (B, N, mem_dim)."""
    B, N, mem_dim = x.shape
    assert adj.shape == (B, N, N)
    assert mem_dim % layers == 0, "mem_dim must be divisible by layers"
    head_dim = mem_dim // layers
    k_final = mem_dim + head_dim * (layers - 1)

    # ---- block sizing ------------------------------------------------------
    if sb is None:
        sb = max(1, 256 // N)                   # sub-batch ~ 256 MXU rows
        if sb >= 8:
            sb = max(8, (sb // 8) * 8)
            if B < 16:
                sb = 8                          # don't over-pad tiny batches
            else:
                # leave room for >= 2 grid steps (v7x dual TensorCore)
                sb = min(sb, max(8, (B // 16) * 8))
    per_sample_bytes = (N * N + 2 * N * mem_dim) * 4
    if n_sub is None:
        target_bytes = 4 << 20                  # ~4 MiB adj+x+out per grid step
        n_sub = max(1, min(64, target_bytes // max(1, sb * per_sample_bytes)))
        while n_sub > 1 and -(-B // (sb * n_sub)) < 2:
            n_sub = max(1, n_sub // 2)
    tb = sb * n_sub
    if tb % 8 != 0:                             # batch-block rows must be 8-aligned
        mult = 8 // math.gcd(tb, 8)
        n_sub *= mult
        tb *= mult
    b_pad = -(-B // tb) * tb

    # ---- pad + lane-dense layouts (fold seq dim into the lane dim) ---------
    if b_pad != B:
        pad = b_pad - B
        adj = jnp.pad(adj, ((0, pad), (0, 0), (0, 0)))
        x = jnp.pad(x, ((0, pad), (0, 0), (0, 0)))
    adj_flat = adj.reshape(b_pad, N * N)
    x_flat = x.reshape(b_pad, N * mem_dim)

    # One parameter slab per kind instead of 2*layers + 2 tiny inputs.
    w_all = jnp.concatenate(list(weights), axis=0)      # (sum_l K_l, head_dim)
    b_all = jnp.concatenate(list(biases), axis=0)       # (layers, head_dim)

    kernel = _make_kernel(layers, head_dim, mem_dim, N, sb, n_sub)
    m_sub = sb * N

    in_specs = [
        pl.BlockSpec((tb, N * N), lambda b: (b, 0)),
        pl.BlockSpec((tb, N * mem_dim), lambda b: (b, 0)),
        pl.BlockSpec(w_all.shape, lambda b: (0, 0)),
        pl.BlockSpec(b_all.shape, lambda b: (0, 0)),
        pl.BlockSpec(w_lin.shape, lambda b: (0, 0)),
        pl.BlockSpec(b_lin.shape, lambda b: (0, 0)),
    ]
    out_spec = pl.BlockSpec((tb, N * mem_dim), lambda b: (b, 0))
    scratch_shapes = [
        pltpu.VMEM((m_sub, k_final), jnp.float32),   # comb = (A+I) @ outputs
        pltpu.VMEM((m_sub, mem_dim), jnp.float32),   # concat(g_l) accumulator
    ]

    # VMEM budget: double-buffered blocks + params + scratch + block-diag temps,
    # capped well under v7x's 64 MiB physical VMEM.
    blk_bytes = tb * (N * N + 2 * N * mem_dim) * 4
    param_bytes = 4 * int(w_all.size + b_all.size + w_lin.size + b_lin.size)
    scratch_bytes = 4 * m_sub * (k_final + mem_dim)
    tmp_bytes = 4 * m_sub * m_sub * 6 + 4 * m_sub * (N * mem_dim + 4 * mem_dim)
    vmem_limit = 2 * (blk_bytes + param_bytes) + scratch_bytes + tmp_bytes
    vmem_limit = int(min(max(2 * vmem_limit, 32 << 20), 48 << 20))

    out = pl.pallas_call(
        kernel,
        out_shape=jax.ShapeDtypeStruct((b_pad, N * mem_dim), x.dtype),
        grid_spec=pltpu.PrefetchScalarGridSpec(
            num_scalar_prefetch=0,
            grid=(b_pad // tb,),
            in_specs=in_specs,
            out_specs=out_spec,
            scratch_shapes=scratch_shapes,
        ),
        compiler_params=pltpu.CompilerParams(
            dimension_semantics=("parallel",),
            vmem_limit_bytes=vmem_limit),
    )(adj_flat, x_flat, w_all, b_all, w_lin, b_lin)

    out = out.reshape(b_pad, N, mem_dim)
    return out[:B] if b_pad != B else out


def reference(adj, x, weights, biases, w_lin, b_lin, *, layers):
    """Pure-JAX reference matching the PyTorch forward (dropout = identity)."""
    denom = jnp.sum(adj, axis=2, keepdims=True) + 1.0
    outputs = x
    cache_list = [outputs]
    output_list = []
    for l in range(layers):
        Ax = jnp.einsum('bij,bjd->bid', adj, outputs)
        AxW = Ax @ weights[l] + biases[l] + outputs @ weights[l] + biases[l]
        AxW = AxW / denom
        g = jax.nn.relu(AxW)
        cache_list.append(g)
        outputs = jnp.concatenate(cache_list, axis=2)
        output_list.append(g)
    gcn_out = jnp.concatenate(output_list, axis=2) + x
    return gcn_out @ w_lin + b_lin


if __name__ == "__main__":
    # Small shapes consistent with the module: batch=2, seq(max_len)=8,
    # mem_dim(hidden)=32, layers=2 -> head_dim=16.
    B, N, mem_dim, layers = 2, 8, 32, 2
    head_dim = mem_dim // layers

    key = jax.random.PRNGKey(0)
    k_adj, k_x, *k_params = jax.random.split(key, 2 + 2 * layers + 2)

    # Dependency-graph-like adjacency (non-negative), float32.
    adj = (jax.random.uniform(k_adj, (B, N, N)) > 0.6).astype(jnp.float32)
    x = jax.random.normal(k_x, (B, N, mem_dim), dtype=jnp.float32)

    # PyTorch-style uniform init, weights pre-transposed to (in, out).
    weights, biases = [], []
    for l in range(layers):
        in_dim = mem_dim + head_dim * l
        bound = 1.0 / np.sqrt(in_dim)
        w = jax.random.uniform(k_params[2 * l], (in_dim, head_dim),
                               minval=-bound, maxval=bound, dtype=jnp.float32)
        bvec = jax.random.uniform(k_params[2 * l + 1], (1, head_dim),
                                  minval=-bound, maxval=bound, dtype=jnp.float32)
        weights.append(w)
        biases.append(bvec)

    bound = 1.0 / np.sqrt(mem_dim)
    w_lin = jax.random.uniform(k_params[-2], (mem_dim, mem_dim),
                               minval=-bound, maxval=bound, dtype=jnp.float32)
    b_lin = jax.random.uniform(k_params[-1], (1, mem_dim),
                               minval=-bound, maxval=bound, dtype=jnp.float32)

    out = graph_conv_layer(adj, x, weights, biases, w_lin, b_lin, layers=layers)
    out = jax.block_until_ready(out)

    ref = reference(adj, x, weights, biases, w_lin, b_lin, layers=layers)
    np.testing.assert_allclose(np.asarray(out), np.asarray(ref),
                               rtol=1e-5, atol=1e-5)

    print("KERNEL_OK")
</pallas_src>

<mosaic_0001>
module attributes {stable_mosaic.version = 11 : i64} {
  func.func @kernel(%arg0: i32, %arg1: memref<8x64xf32, #tpu.memory_space<vmem>>, %arg2: memref<8x256xf32, #tpu.memory_space<vmem>>, %arg3: memref<80x16xf32, #tpu.memory_space<vmem>>, %arg4: memref<2x16xf32, #tpu.memory_space<vmem>>, %arg5: memref<32x32xf32, #tpu.memory_space<vmem>>, %arg6: memref<1x32xf32, #tpu.memory_space<vmem>>, %arg7: memref<8x256xf32, #tpu.memory_space<vmem>>, %arg8: memref<64x48xf32, #tpu.memory_space<vmem>>, %arg9: memref<64x32xf32, #tpu.memory_space<vmem>>) attributes {dimension_semantics = [#tpu.dimension_semantics<parallel>], iteration_bounds = array<i64: 1>, scalar_prefetch = 0 : i64, scratch_operands = 2 : i64, tpu.core_type = #tpu.core_type<tc>, window_params = [{transform_indices = @transform_0, window_bounds = array<i64: 8, 64>}, {transform_indices = @transform_1, window_bounds = array<i64: 8, 256>}, {pipeline_mode = #tpu.pipeline_mode<synchronous>, transform_indices = @transform_2, window_bounds = array<i64: 80, 16>}, {pipeline_mode = #tpu.pipeline_mode<synchronous>, transform_indices = @transform_3, window_bounds = array<i64: 2, 16>}, {pipeline_mode = #tpu.pipeline_mode<synchronous>, transform_indices = @transform_4, window_bounds = array<i64: 32, 32>}, {pipeline_mode = #tpu.pipeline_mode<synchronous>, transform_indices = @transform_5, window_bounds = array<i64: 1, 32>}, {transform_indices = @transform_6, window_bounds = array<i64: 8, 256>}]} {
    %c0 = arith.constant 0 : index
    %c0_0 = arith.constant 0 : index
    %0 = vector.load %arg5[%c0, %c0_0] : memref<32x32xf32, #tpu.memory_space<vmem>>, vector<32x32xf32>
    %c0_1 = arith.constant 0 : index
    %c0_2 = arith.constant 0 : index
    %1 = vector.load %arg6[%c0_1, %c0_2] : memref<1x32xf32, #tpu.memory_space<vmem>>, vector<1x32xf32>
    %2 = tpu.iota {dimensions = array<i32: 0>} : vector<64x64xi32>
    %3 = tpu.iota {dimensions = array<i32: 1>} : vector<64x64xi32>
    %c8_i32 = arith.constant 8 : i32
    %c0_i32 = arith.constant 0 : i32
    %4 = arith.cmpi eq, %c8_i32, %c0_i32 : i32
    %c1_i32 = arith.constant 1 : i32
    %5 = arith.select %4, %c1_i32, %c8_i32 : i32
    %6 = vector.broadcast %5 : i32 to vector<64x64xi32>
    %7 = arith.remsi %2, %6 : vector<64x64xi32>
    %c0_i32_3 = arith.constant 0 : i32
    %8 = vector.broadcast %c0_i32_3 : i32 to vector<64x64xi32>
    %9 = arith.cmpi ne, %7, %8 : vector<64x64xi32>
    %c0_i32_4 = arith.constant 0 : i32
    %10 = vector.broadcast %c0_i32_4 : i32 to vector<64x64xi32>
    %11 = arith.cmpi slt, %7, %10 : vector<64x64xi32>
    %c0_i32_5 = arith.constant 0 : i32
    %12 = arith.cmpi slt, %5, %c0_i32_5 : i32
    %13 = vector.broadcast %12 : i1 to vector<64x64xi1>
    %14 = vector.broadcast %13 : vector<64x64xi1> to vector<64x64xi1>
    %15 = arith.xori %11, %14 : vector<64x64xi1>
    %16 = arith.andi %15, %9 : vector<64x64xi1>
    %17 = vector.broadcast %5 : i32 to vector<64x64xi32>
    %18 = arith.addi %7, %17 : vector<64x64xi32>
    %19 = arith.select %16, %18, %7 : vector<64x64xi1>, vector<64x64xi32>
    %c8_i32_6 = arith.constant 8 : i32
    %c0_i32_7 = arith.constant 0 : i32
    %20 = arith.cmpi eq, %c8_i32_6, %c0_i32_7 : i32
    %c1_i32_8 = arith.constant 1 : i32
    %21 = arith.select %20, %c1_i32_8, %c8_i32_6 : i32
    %22 = vector.broadcast %21 : i32 to vector<64x64xi32>
    %23 = arith.remsi %3, %22 : vector<64x64xi32>
    %c0_i32_9 = arith.constant 0 : i32
    %24 = vector.broadcast %c0_i32_9 : i32 to vector<64x64xi32>
    %25 = arith.cmpi ne, %23, %24 : vector<64x64xi32>
    %c0_i32_10 = arith.constant 0 : i32
    %26 = vector.broadcast %c0_i32_10 : i32 to vector<64x64xi32>
    %27 = arith.cmpi slt, %23, %26 : vector<64x64xi32>
    %c0_i32_11 = arith.constant 0 : i32
    %28 = arith.cmpi slt, %21, %c0_i32_11 : i32
    %29 = vector.broadcast %28 : i1 to vector<64x64xi1>
    %30 = vector.broadcast %29 : vector<64x64xi1> to vector<64x64xi1>
    %31 = arith.xori %27, %30 : vector<64x64xi1>
    %32 = arith.andi %31, %25 : vector<64x64xi1>
    %33 = vector.broadcast %21 : i32 to vector<64x64xi32>
    %34 = arith.addi %23, %33 : vector<64x64xi32>
    %35 = arith.select %32, %34, %23 : vector<64x64xi1>, vector<64x64xi32>
    %36 = arith.cmpi eq, %19, %35 : vector<64x64xi32>
    %37 = arith.cmpi eq, %2, %3 : vector<64x64xi32>
    %38 = arith.extui %37 : vector<64x64xi1> to vector<64x64xi32>
    %39 = arith.sitofp %38 : vector<64x64xi32> to vector<64x64xf32>
    %c0_12 = arith.constant 0 : index
    %c0_13 = arith.constant 0 : index
    %40 = vector.load %arg1[%c0_12, %c0_13] : memref<8x64xf32, #tpu.memory_space<vmem>>, vector<8x64xf32>
    %c0_14 = arith.constant 0 : index
    %c0_15 = arith.constant 0 : index
    %41 = vector.load %arg2[%c0_14, %c0_15] : memref<8x256xf32, #tpu.memory_space<vmem>>, vector<8x256xf32>
    %42 = vector.extract_strided_slice %40 {offsets = [0, 0], sizes = [8, 8], strides = [1, 1]} : vector<8x64xf32> to vector<8x8xf32>
    %43 = vector.extract_strided_slice %40 {offsets = [0, 8], sizes = [8, 8], strides = [1, 1]} : vector<8x64xf32> to vector<8x8xf32>
    %44 = vector.extract_strided_slice %40 {offsets = [0, 16], sizes = [8, 8], strides = [1, 1]} : vector<8x64xf32> to vector<8x8xf32>
    %45 = vector.extract_strided_slice %40 {offsets = [0, 24], sizes = [8, 8], strides = [1, 1]} : vector<8x64xf32> to vector<8x8xf32>
    %46 = vector.extract_strided_slice %40 {offsets = [0, 32], sizes = [8, 8], strides = [1, 1]} : vector<8x64xf32> to vector<8x8xf32>
    %47 = vector.extract_strided_slice %40 {offsets = [0, 40], sizes = [8, 8], strides = [1, 1]} : vector<8x64xf32> to vector<8x8xf32>
    %48 = vector.extract_strided_slice %40 {offsets = [0, 48], sizes = [8, 8], strides = [1, 1]} : vector<8x64xf32> to vector<8x8xf32>
    %49 = vector.extract_strided_slice %40 {offsets = [0, 56], sizes = [8, 8], strides = [1, 1]} : vector<8x64xf32> to vector<8x8xf32>
    %50 = tpu.concatenate %42, %43, %44, %45, %46, %47, %48, %49 in 0 : vector<8x8xf32>, vector<8x8xf32>, vector<8x8xf32>, vector<8x8xf32>, vector<8x8xf32>, vector<8x8xf32>, vector<8x8xf32>, vector<8x8xf32> -> vector<64x8xf32>
    %51 = vector.extract_strided_slice %41 {offsets = [0, 0], sizes = [8, 32], strides = [1, 1]} : vector<8x256xf32> to vector<8x32xf32>
    %52 = vector.extract_strided_slice %41 {offsets = [0, 32], sizes = [8, 32], strides = [1, 1]} : vector<8x256xf32> to vector<8x32xf32>
    %53 = vector.extract_strided_slice %41 {offsets = [0, 64], sizes = [8, 32], strides = [1, 1]} : vector<8x256xf32> to vector<8x32xf32>
    %54 = vector.extract_strided_slice %41 {offsets = [0, 96], sizes = [8, 32], strides = [1, 1]} : vector<8x256xf32> to vector<8x32xf32>
    %55 = vector.extract_strided_slice %41 {offsets = [0, 128], sizes = [8, 32], strides = [1, 1]} : vector<8x256xf32> to vector<8x32xf32>
    %56 = vector.extract_strided_slice %41 {offsets = [0, 160], sizes = [8, 32], strides = [1, 1]} : vector<8x256xf32> to vector<8x32xf32>
    %57 = vector.extract_strided_slice %41 {offsets = [0, 192], sizes = [8, 32], strides = [1, 1]} : vector<8x256xf32> to vector<8x32xf32>
    %58 = vector.extract_strided_slice %41 {offsets = [0, 224], sizes = [8, 32], strides = [1, 1]} : vector<8x256xf32> to vector<8x32xf32>
    %59 = tpu.concatenate %51, %52, %53, %54, %55, %56, %57, %58 in 0 : vector<8x32xf32>, vector<8x32xf32>, vector<8x32xf32>, vector<8x32xf32>, vector<8x32xf32>, vector<8x32xf32>, vector<8x32xf32>, vector<8x32xf32> -> vector<64x32xf32>
    %60 = vector.extract_strided_slice %50 {offsets = [0, 0], sizes = [64, 1], strides = [1, 1]} : vector<64x8xf32> to vector<64x1xf32>
    %61 = vector.shape_cast %60 : vector<64x1xf32> to vector<64x1xf32>
    %62 = vector.broadcast %61 : vector<64x1xf32> to vector<64x8xf32>
    %63 = vector.extract_strided_slice %50 {offsets = [0, 1], sizes = [64, 1], strides = [1, 1]} : vector<64x8xf32> to vector<64x1xf32>
    %64 = vector.shape_cast %63 : vector<64x1xf32> to vector<64x1xf32>
    %65 = vector.broadcast %64 : vector<64x1xf32> to vector<64x8xf32>
    %66 = vector.extract_strided_slice %50 {offsets = [0, 2], sizes = [64, 1], strides = [1, 1]} : vector<64x8xf32> to vector<64x1xf32>
    %67 = vector.shape_cast %66 : vector<64x1xf32> to vector<64x1xf32>
    %68 = vector.broadcast %67 : vector<64x1xf32> to vector<64x8xf32>
    %69 = vector.extract_strided_slice %50 {offsets = [0, 3], sizes = [64, 1], strides = [1, 1]} : vector<64x8xf32> to vector<64x1xf32>
    %70 = vector.shape_cast %69 : vector<64x1xf32> to vector<64x1xf32>
    %71 = vector.broadcast %70 : vector<64x1xf32> to vector<64x8xf32>
    %72 = vector.extract_strided_slice %50 {offsets = [0, 4], sizes = [64, 1], strides = [1, 1]} : vector<64x8xf32> to vector<64x1xf32>
    %73 = vector.shape_cast %72 : vector<64x1xf32> to vector<64x1xf32>
    %74 = vector.broadcast %73 : vector<64x1xf32> to vector<64x8xf32>
    %75 = vector.extract_strided_slice %50 {offsets = [0, 5], sizes = [64, 1], strides = [1, 1]} : vector<64x8xf32> to vector<64x1xf32>
    %76 = vector.shape_cast %75 : vector<64x1xf32> to vector<64x1xf32>
    %77 = vector.broadcast %76 : vector<64x1xf32> to vector<64x8xf32>
    %78 = vector.extract_strided_slice %50 {offsets = [0, 6], sizes = [64, 1], strides = [1, 1]} : vector<64x8xf32> to vector<64x1xf32>
    %79 = vector.shape_cast %78 : vector<64x1xf32> to vector<64x1xf32>
    %80 = vector.broadcast %79 : vector<64x1xf32> to vector<64x8xf32>
    %81 = vector.extract_strided_slice %50 {offsets = [0, 7], sizes = [64, 1], strides = [1, 1]} : vector<64x8xf32> to vector<64x1xf32>
    %82 = vector.shape_cast %81 : vector<64x1xf32> to vector<64x1xf32>
    %83 = vector.broadcast %82 : vector<64x1xf32> to vector<64x8xf32>
    %84 = tpu.concatenate %62, %65, %68, %71, %74, %77, %80, %83 in 1 : vector<64x8xf32>, vector<64x8xf32>, vector<64x8xf32>, vector<64x8xf32>, vector<64x8xf32>, vector<64x8xf32>, vector<64x8xf32>, vector<64x8xf32> -> vector<64x64xf32>
    %cst = arith.constant 0.000000e+00 : f32
    %85 = vector.broadcast %cst : f32 to vector<64x64xf32>
    %86 = arith.select %36, %84, %85 : vector<64x64xi1>, vector<64x64xf32>
    %87 = arith.addf %86, %39 : vector<64x64xf32>
    %cst_16 = arith.constant dense<0.000000e+00> : vector<64xf32>
    %88 = vector.multi_reduction <add>, %50, %cst_16 [1] : vector<64x8xf32> to vector<64xf32>
    %89 = vector.shape_cast %88 : vector<64xf32> to vector<64x1xf32>
    %cst_17 = arith.constant 1.000000e+00 : f32
    %90 = vector.broadcast %cst_17 : f32 to vector<64x1xf32>
    %91 = arith.addf %89, %90 : vector<64x1xf32>
    %92 = tpu.reciprocal %91 {approx = true} : vector<64x1xf32> -> vector<64x1xf32>
    %93 = arith.mulf %91, %92 : vector<64x1xf32>
    %cst_18 = arith.constant 2.000000e+00 : f32
    %94 = vector.broadcast %cst_18 : f32 to vector<64x1xf32>
    %95 = arith.subf %94, %93 : vector<64x1xf32>
    %96 = arith.mulf %92, %95 : vector<64x1xf32>
    %cst_19 = arith.constant dense<0.000000e+00> : vector<64x32xf32>
    %97 = tpu.matmul %87, %59, %cst_19 {dimension_numbers = #tpu.dot_dimension_numbers<[1], [0], [0], [1], [0, 0, 1, 1], [], []>} : vector<64x64xf32>, vector<64x32xf32>, vector<64x32xf32> -> vector<64x32xf32>
    %c0_20 = arith.constant 0 : index
    %c0_21 = arith.constant 0 : index
    %98 = vector.load %arg8[%c0_20, %c0_21] : memref<64x48xf32, #tpu.memory_space<vmem>>, vector<64x32xf32>
    tpu.vector_store %arg8[%c0_20, %c0_21], %97 {strides = array<i32>} : memref<64x48xf32, #tpu.memory_space<vmem>>, vector<64x32xf32>,
    %c0_22 = arith.constant 0 : index
    %c0_23 = arith.constant 0 : index
    %99 = vector.load %arg3[%c0_22, %c0_23] : memref<80x16xf32, #tpu.memory_space<vmem>>, vector<32x16xf32>
    %c0_24 = arith.constant 0 : index
    %c0_25 = arith.constant 0 : index
    %100 = vector.load %arg4[%c0_24, %c0_25] : memref<2x16xf32, #tpu.memory_space<vmem>>, vector<1x16xf32>
    %c0_26 = arith.constant 0 : index
    %c0_27 = arith.constant 0 : index
    %101 = vector.load %arg8[%c0_26, %c0_27] : memref<64x48xf32, #tpu.memory_space<vmem>>, vector<64x32xf32>
    %cst_28 = arith.constant dense<0.000000e+00> : vector<64x16xf32>
    %102 = tpu.matmul %101, %99, %cst_28 {dimension_numbers = #tpu.dot_dimension_numbers<[1], [0], [0], [1], [0, 0, 1, 1], [], []>} : vector<64x32xf32>, vector<32x16xf32>, vector<64x16xf32> -> vector<64x16xf32>
    %cst_29 = arith.constant 2.000000e+00 : f32
    %103 = vector.broadcast %cst_29 : f32 to vector<1x16xf32>
    %104 = arith.mulf %103, %100 : vector<1x16xf32>
    %105 = vector.broadcast %104 : vector<1x16xf32> to vector<64x16xf32>
    %106 = arith.addf %102, %105 : vector<64x16xf32>
    %107 = vector.broadcast %96 : vector<64x1xf32> to vector<64x16xf32>
    %108 = arith.mulf %106, %107 : vector<64x16xf32>
    %cst_30 = arith.constant 0.000000e+00 : f32
    %109 = vector.broadcast %cst_30 : f32 to vector<64x16xf32>
    %110 = arith.maximumf %108, %109 : vector<64x16xf32>
    %c0_31 = arith.constant 0 : index
    %c0_32 = arith.constant 0 : index
    %111 = vector.load %arg9[%c0_31, %c0_32] : memref<64x32xf32, #tpu.memory_space<vmem>>, vector<64x16xf32>
    tpu.vector_store %arg9[%c0_31, %c0_32], %110 {strides = array<i32>} : memref<64x32xf32, #tpu.memory_space<vmem>>, vector<64x16xf32>,
    %cst_33 = arith.constant dense<0.000000e+00> : vector<64x16xf32>
    %112 = tpu.matmul %87, %110, %cst_33 {dimension_numbers = #tpu.dot_dimension_numbers<[1], [0], [0], [1], [0, 0, 1, 1], [], []>} : vector<64x64xf32>, vector<64x16xf32>, vector<64x16xf32> -> vector<64x16xf32>
    %c0_34 = arith.constant 0 : index
    %c32 = arith.constant 32 : index
    %113 = vector.load %arg8[%c0_34, %c32] : memref<64x48xf32, #tpu.memory_space<vmem>>, vector<64x16xf32>
    tpu.vector_store %arg8[%c0_34, %c32], %112 {strides = array<i32>} : memref<64x48xf32, #tpu.memory_space<vmem>>, vector<64x16xf32>,
    %c32_35 = arith.constant 32 : index
    %c0_36 = arith.constant 0 : index
    %114 = vector.load %arg3[%c32_35, %c0_36] : memref<80x16xf32, #tpu.memory_space<vmem>>, vector<48x16xf32>
    %c1 = arith.constant 1 : index
    %c0_37 = arith.constant 0 : index
    %115 = vector.load %arg4[%c1, %c0_37] : memref<2x16xf32, #tpu.memory_space<vmem>>, vector<1x16xf32>
    %c0_38 = arith.constant 0 : index
    %c0_39 = arith.constant 0 : index
    %116 = vector.load %arg8[%c0_38, %c0_39] : memref<64x48xf32, #tpu.memory_space<vmem>>, vector<64x48xf32>
    %cst_40 = arith.constant dense<0.000000e+00> : vector<64x16xf32>
    %117 = tpu.matmul %116, %114, %cst_40 {dimension_numbers = #tpu.dot_dimension_numbers<[1], [0], [0], [1], [0, 0, 1, 1], [], []>} : vector<64x48xf32>, vector<48x16xf32>, vector<64x16xf32> -> vector<64x16xf32>
    %cst_41 = arith.constant 2.000000e+00 : f32
    %118 = vector.broadcast %cst_41 : f32 to vector<1x16xf32>
    %119 = arith.mulf %118, %115 : vector<1x16xf32>
    %120 = vector.broadcast %119 : vector<1x16xf32> to vector<64x16xf32>
    %121 = arith.addf %117, %120 : vector<64x16xf32>
    %122 = vector.broadcast %96 : vector<64x1xf32> to vector<64x16xf32>
    %123 = arith.mulf %121, %122 : vector<64x16xf32>
    %cst_42 = arith.constant 0.000000e+00 : f32
    %124 = vector.broadcast %cst_42 : f32 to vector<64x16xf32>
    %125 = arith.maximumf %123, %124 : vector<64x16xf32>
    %c0_43 = arith.constant 0 : index
    %c16 = arith.constant 16 : index
    %126 = vector.load %arg9[%c0_43, %c16] : memref<64x32xf32, #tpu.memory_space<vmem>>, vector<64x16xf32>
    tpu.vector_store %arg9[%c0_43, %c16], %125 {strides = array<i32>} : memref<64x32xf32, #tpu.memory_space<vmem>>, vector<64x16xf32>,
    %c0_44 = arith.constant 0 : index
    %c0_45 = arith.constant 0 : index
    %127 = vector.load %arg9[%c0_44, %c0_45] : memref<64x32xf32, #tpu.memory_space<vmem>>, vector<64x32xf32>
    %128 = arith.addf %127, %59 : vector<64x32xf32>
    %cst_46 = arith.constant dense<0.000000e+00> : vector<64x32xf32>
    %129 = tpu.matmul %128, %0, %cst_46 {dimension_numbers = #tpu.dot_dimension_numbers<[1], [0], [0], [1], [0, 0, 1, 1], [], []>} : vector<64x32xf32>, vector<32x32xf32>, vector<64x32xf32> -> vector<64x32xf32>
    %130 = vector.broadcast %1 : vector<1x32xf32> to vector<64x32xf32>
    %131 = arith.addf %129, %130 : vector<64x32xf32>
    %132 = vector.extract_strided_slice %131 {offsets = [0, 0], sizes = [8, 32], strides = [1, 1]} : vector<64x32xf32> to vector<8x32xf32>
    %133 = vector.extract_strided_slice %131 {offsets = [8, 0], sizes = [8, 32], strides = [1, 1]} : vector<64x32xf32> to vector<8x32xf32>
    %134 = vector.extract_strided_slice %131 {offsets = [16, 0], sizes = [8, 32], strides = [1, 1]} : vector<64x32xf32> to vector<8x32xf32>
    %135 = vector.extract_strided_slice %131 {offsets = [24, 0], sizes = [8, 32], strides = [1, 1]} : vector<64x32xf32> to vector<8x32xf32>
    %136 = vector.extract_strided_slice %131 {offsets = [32, 0], sizes = [8, 32], strides = [1, 1]} : vector<64x32xf32> to vector<8x32xf32>
    %137 = vector.extract_strided_slice %131 {offsets = [40, 0], sizes = [8, 32], strides = [1, 1]} : vector<64x32xf32> to vector<8x32xf32>
    %138 = vector.extract_strided_slice %131 {offsets = [48, 0], sizes = [8, 32], strides = [1, 1]} : vector<64x32xf32> to vector<8x32xf32>
    %139 = vector.extract_strided_slice %131 {offsets = [56, 0], sizes = [8, 32], strides = [1, 1]} : vector<64x32xf32> to vector<8x32xf32>
    %140 = tpu.concatenate %132, %133, %134, %135, %136, %137, %138, %139 in 1 : vector<8x32xf32>, vector<8x32xf32>, vector<8x32xf32>, vector<8x32xf32>, vector<8x32xf32>, vector<8x32xf32>, vector<8x32xf32>, vector<8x32xf32> -> vector<8x256xf32>
    %c0_47 = arith.constant 0 : index
    %c0_48 = arith.constant 0 : index
    %141 = vector.load %arg7[%c0_47, %c0_48] : memref<8x256xf32, #tpu.memory_space<vmem>>, vector<8x256xf32>
    tpu.vector_store %arg7[%c0_47, %c0_48], %140 {strides = array<i32>} : memref<8x256xf32, #tpu.memory_space<vmem>>, vector<8x256xf32>,
    return
  }
  func.func @transform_0(%arg0: i32) -> (i32, i32) {
    %c0_i32 = arith.constant 0 : i32
    %c0_i32_0 = arith.constant 0 : i32
    return %arg0, %c0_i32 : i32, i32
  }
  func.func @transform_1(%arg0: i32) -> (i32, i32) {
    %c0_i32 = arith.constant 0 : i32
    %c0_i32_0 = arith.constant 0 : i32
    return %arg0, %c0_i32 : i32, i32
  }
  func.func @transform_2(%arg0: i32) -> (i32, i32) {
    %c0_i32 = arith.constant 0 : i32
    %c0_i32_0 = arith.constant 0 : i32
    %c0_i32_1 = arith.constant 0 : i32
    return %c0_i32, %c0_i32_0 : i32, i32
  }
  func.func @transform_3(%arg0: i32) -> (i32, i32) {
    %c0_i32 = arith.constant 0 : i32
    %c0_i32_0 = arith.constant 0 : i32
    %c0_i32_1 = arith.constant 0 : i32
    return %c0_i32, %c0_i32_0 : i32, i32
  }
  func.func @transform_4(%arg0: i32) -> (i32, i32) {
    %c0_i32 = arith.constant 0 : i32
    %c0_i32_0 = arith.constant 0 : i32
    %c0_i32_1 = arith.constant 0 : i32
    return %c0_i32, %c0_i32_0 : i32, i32
  }
  func.func @transform_5(%arg0: i32) -> (i32, i32) {
    %c0_i32 = arith.constant 0 : i32
    %c0_i32_0 = arith.constant 0 : i32
    %c0_i32_1 = arith.constant 0 : i32
    return %c0_i32, %c0_i32_0 : i32, i32
  }
  func.func @transform_6(%arg0: i32) -> (i32, i32) {
    %c0_i32 = arith.constant 0 : i32
    %c0_i32_0 = arith.constant 0 : i32
    return %arg0, %c0_i32 : i32, i32
  }
}

</mosaic_0001>

<bundles_post_ra>
// kernel: tpu_custom_call.1
= control target key start
LH: loop header
LB: loop body
LE: loop exit
PB: predicated region body
PF: predicated region fallthrough
CT: control target
= control target key end

     0   :  { %s1340_s23 = smov 120   ;;  %v1341_v1 = vmov 0   ;;  %s1342_s24 = smov 104   ;;  %s1978_s0 = inlined_call_operand.vmem [shape: f32[8,64], index: 0, kind: input, shape index: {}]   ;;  %s1979_s1 = inlined_call_operand.vmem [shape: f32[8,256], index: 1, kind: input, shape index: {}]   ;;  %s1980_s2 = inlined_call_operand.vmem [shape: f32[80,16], index: 2, kind: input, shape index: {}]   ;;  %s1981_s3 = inlined_call_operand.vmem [shape: f32[2,16], index: 3, kind: input, shape index: {}]   ;;  %s1982_s4 = inlined_call_operand.vmem [shape: f32[32,32], index: 4, kind: input, shape index: {}]   ;;  %s1983_s5 = inlined_call_operand.vmem [shape: f32[1,32], index: 5, kind: input, shape index: {}]   ;;  %s1984_s6 = inlined_call_operand.hbm [shape: f32[8,256], index: 6, kind: output, shape index: {}]  }
   0x1   :  { %v1398_v0 = vld [vmem:[%s1978_s0] sm:$0xff]  ;;  %1232 = vset.pattern.permute.xlu1 %v1341_v1  ;;  %v1406_v2 = vld [vmem:[%s1979_s1 + $0x8] sm:$0xff] }
   0x2   :  { %184 = vrot.lane.b32.xlu0 %v1398_v0, %s1340_s23  ;;  %190 = vrot.lane.b32.xlu1 %v1398_v0, %s1342_s24 }
   0x3   :  { %11 = vsyncpa [#allocation5], 0  ;;  %s1343_s27 = smov 32   ;;  %s1344_s0 = smov 112   ;;  %v1347_v3 = vmov 1   ;;  %v1349_v4 = vmov 2   ;;  %v29_v32 = vlaneseq }
   0x4   :  { %222 = vrot.lane.b32.xlu2 %v1406_v2, %s1343_s27  ;;  %s1345_s28 = smov 96   ;;  %s1346_s29 = smov 64   ;;  %v1350_v5 = vmov 5   ;;  %v1351_v6 = vmov 3   ;;  %v1429_v7 = vld [vmem:[%s1979_s1] sm:$0xff]  ;;  %v1352_v8 = vmov 4  }
   0x5   :  { %1233 = vset.pattern.permute.xlu2 %v1347_v3  ;;  %s1348_s30 = smov 88   ;;  %1251 = vset.pattern.permute.xlu0 %v1350_v5  ;;  %v1353_v9 = vmov 6   ;;  %v1354_v10 = vmov 7   ;;  %s1355_s9 = smov 72   ;;  %vm481_vm0 = vcmask 64512   ;;  %vm490_vm1 = vcmask 130048  }
   0x6   :  { %s1356_s10 = smov 80   ;;  %vm499_vm2 = vcmask 195584   ;;  %vm508_vm3 = vcmask 261120   ;;  %vm517_vm4 = vcmask 326656   ;;  %vm526_vm5 = vcmask 392192   ;;  %s1358_s12 = smov 16  }
   0x7   :  { %vm535_vm6 = vcmask 457728   ;;  %v1505_v34 = vshrl.u32 %v29_v32, 7  ;;  %v1507_v35 = vand.u32 127, %v29_v32  ;;  %v1357_v40 = vmov 0.0   ;;  %s1147_s24 = sshll.u32 %s1984_s6, 4  ;;  %s1148_s24 = int_to_ptr.hbm [resolvable:$true] %s1147_s24 }
   0x8   :  { %vm624_vm9 = vcmask 523264  }
   0x9   :  { %v44_v38 = vand.u32 7, %v1505_v34  ;;  %v1513_v39 = vand.u32 7, %v1507_v35  ;;  %vm156_vm7 = vcmp.eq.s32.totalorder %v1505_v34, %v1507_v35  ;;  %v31_v62 = vadd.s32 8, %v1505_v34 }
   0xa   :  { %187 = vrot.lane.b32.xlu0 %v1398_v0, %s1344_s0  ;;  %193 = vrot.lane.b32.xlu1 %v1398_v0, %s1345_s28  ;;  %v1156_v41 = vsel %vm156_vm7, 1.0, %v1357_v40 }
   0xb   :  { %vm148_vm8 = vcmp.eq.s32.totalorder %v44_v38, %v1513_v39  ;;  %vm157_vm10 = vcmp.eq.s32.totalorder %v31_v62, %v1507_v35 }
   0xc   :  { %219 = vrot.lane.b32.xlu2 %v1406_v2, %s1346_s29 }
  0x12   :  { %216 = vrot.lane.b32.xlu0 %v1406_v2, %s1345_s28  ;;  %226 = vperm.xlu1 %1232, %v1398_v0  }
  0x14   :  { %258 = vperm.xlu2 %1233, %v1398_v0  }
  0x1a   :  { %196 = vrot.lane.b32.xlu0 %v1398_v0, %s1348_s30  ;;  %1234 = vset.pattern.permute.xlu1 %v1349_v4 }
  0x1b   :  { %290 = vperm.xlu1 %1234, %v1398_v0  }
  0x1c   :  { %1235 = vset.pattern.permute.xlu2 %v1351_v6 }
  0x1d   :  { %322 = vperm.xlu2 %1235, %v1398_v0  }
  0x22   :  { %212 = vrot.lane.b32.xlu0 %v1429_v7, %s1343_s27 }
  0x23   :  { %1236 = vset.pattern.permute.xlu1 %v1352_v8 }
  0x24   :  { %354 = vperm.xlu1 %1236, %v1398_v0  }
  0x25   :  { %1237 = vset.pattern.permute.xlu2 %v1350_v5 }
  0x26   :  { %386 = vperm.xlu2 %1237, %v1398_v0  }
  0x2a   :  { %209 = vrot.lane.b32.xlu0 %v1429_v7, %s1346_s29 }
  0x2c   :  { %1238 = vset.pattern.permute.xlu1 %v1353_v9 }
  0x2d   :  { %418 = vperm.xlu1 %1238, %v1398_v0  }
  0x2e   :  { %1239 = vset.pattern.permute.xlu2 %v1354_v10 }
  0x2f   :  { %450 = vperm.xlu2 %1239, %v1398_v0  }
  0x32   :  { %206 = vrot.lane.b32.xlu0 %v1429_v7, %s1345_s28 }
  0x35   :  { %202 = vrot.lane.b32.xlu1 %v1398_v0, %s1355_s9 }
  0x36   :  { %1240 = vset.pattern.permute.xlu1 %v1341_v1 }
  0x37   :  { %1241 = vset.pattern.permute.xlu2 %v1347_v3 }
  0x3a   :  { %199 = vrot.lane.b32.xlu0 %v1398_v0, %s1356_s10 }
  0x5e   :  { %v1455_v13 = vpop.permute.xlu2 %222 }
  0x5f   :  { %657 = vmatpush.msra.mxu0 %v1455_v13 }
  0x66   :  { %v1467_v16 = vpop.permute.xlu2 %219 }
  0x67   :  { %658 = vmatpush.msra.mxu0 %v1467_v16 }
  0x6e   :  { %v259_v19 = vpop.permute.xlu2 %258 }
  0x74   :  { %v1449_v11 = vpop.permute.xlu0 %184  ;;  %v1453_v12 = vpop.permute.xlu1 %190 }
  0x75   :  { %262 = vperm.xlu2 %1241, %v1449_v11   ;;  %230 = vperm.xlu1 %1240, %v1449_v11  }
  0x77   :  { %v323_v23 = vpop.permute.xlu2 %322 }
  0x7c   :  { %v1458_v14 = vpop.permute.xlu0 %187  ;;  %v1462_v15 = vpop.permute.xlu1 %193 }
  0x7d   :  { %1243 = vset.pattern.permute.xlu2 %v1351_v6  ;;  %1242 = vset.pattern.permute.xlu1 %v1349_v4 }
  0x7e   :  { %394 = vperm.xlu0 %1251, %v1458_v14   ;;  %326 = vperm.xlu2 %1243, %v1449_v11  }
  0x7f   :  { %294 = vperm.xlu1 %1242, %v1449_v11  }
  0x80   :  { %v387_v28 = vpop.permute.xlu2 %386 }
  0x84   :  { %v1470_v17 = vpop.permute.xlu0 %216  ;;  %v227_v18 = vpop.permute.xlu1 %226 }
  0x85   :  { %659 = vmatpush.msra.mxu0 %v1470_v17  ;;  %v482_v22 = vsel %vm481_vm0, %v227_v18, %v259_v19  ;;  %v51_v19 = vand.u32 7, %v31_v62 }
  0x86   :  { %1256 = vset.pattern.permute.xlu0 %v1349_v4  ;;  %1245 = vset.pattern.permute.xlu2 %v1353_v9 }
  0x87   :  { %1244 = vset.pattern.permute.xlu1 %v1350_v5  ;;  %302 = vperm.xlu0 %1256, %v1453_v12   ;;  %vm149_vm11 = vcmp.eq.s32.totalorder %v51_v19, %v1513_v39 }
  0x88   :  { %422 = vperm.xlu2 %1245, %v1449_v11   ;;  %390 = vperm.xlu1 %1244, %v1449_v11  }
  0x89   :  { %660 = vmatpush.msra.mxu0 %v1406_v2  ;;  %v451_v37 = vpop.permute.xlu2 %450 }
  0x8c   :  { %v1480_v20 = vpop.permute.xlu0 %196 }
  0x8d   :  { %v291_v21 = vpop.permute.xlu1 %290  ;;  %v575_v59 = vsel %vm481_vm0, %v1480_v20, 0.0 }
  0x8e   :  { %v491_v25 = vsel %vm490_vm1, %v482_v22, %v291_v21 }
  0x8f   :  { %1261 = vset.pattern.permute.xlu0 %v1354_v10  ;;  %v500_v27 = vsel %vm499_vm2, %v491_v25, %v323_v23 }
  0x90   :  { %1247 = vset.pattern.permute.xlu2 %v1341_v1  ;;  %1246 = vset.pattern.permute.xlu1 %v1354_v10 }
  0x91   :  { %462 = vperm.xlu0 %1261, %v1453_v12   ;;  %454 = vperm.xlu1 %1246, %v1449_v11  }
  0x92   :  { %234 = vperm.xlu2 %1247, %v1458_v14  }
  0x94   :  { %v1489_v24 = vpop.permute.xlu0 %212 }
  0x95   :  { %661 = vmatpush.msra.mxu0 %v1489_v24 }
  0x96   :  { %v355_v26 = vpop.permute.xlu1 %354 }
  0x97   :  { %v509_v29 = vsel %vm508_vm3, %v500_v27, %v355_v26 }
  0x98   :  { %v518_v31 = vsel %vm517_vm4, %v509_v29, %v387_v28 }
  0x99   :  { %1262 = vset.pattern.permute.xlu0 %v1352_v8  ;;  %1249 = vset.pattern.permute.xlu1 %v1351_v6 }
  0x9a   :  { %358 = vperm.xlu0 %1262, %v1449_v11   ;;  %1248 = vset.pattern.permute.xlu2 %v1349_v4 }
  0x9b   :  { %330 = vperm.xlu1 %1249, %v1458_v14   ;;  %298 = vperm.xlu2 %1248, %v1458_v14  }
  0x9c   :  { %v1501_v30 = vpop.permute.xlu0 %209 }
  0x9d   :  { %662 = vmatpush.msra.mxu0 %v1501_v30 }
  0x9f   :  { %v419_v33 = vpop.permute.xlu1 %418 }
  0xa0   :  { %v527_v36 = vsel %vm526_vm5, %v518_v31, %v419_v33  ;;  %v32_v33 = vadd.s32 16, %v1505_v34 }
  0xa1   :  { %v536_v42 = vsel %vm535_vm6, %v527_v36, %v451_v37 }
  0xa2   :  { %370 = vperm.xlu0 %1262, %v1462_v15   ;;  %v544_v44 = vsel %vm148_vm8, %v536_v42, 0.0  ;;  %vm158_vm12 = vcmp.eq.s32.totalorder %v32_v33, %v1507_v35 }
  0xa3   :  { %1252 = vset.pattern.permute.xlu1 %v1353_v9  ;;  %1250 = vset.pattern.permute.xlu2 %v1352_v8  ;;  %v1527_v45 = vadd.f32 %v1156_v41, %v544_v44  ;;  %v58_v41 = vand.u32 7, %v32_v33 }
  0xa4   :  { %426 = vperm.xlu1 %1252, %v1458_v14   ;;  %362 = vperm.xlu2 %1250, %v1458_v14   ;;  %v1523_v43 = vpop.permute.xlu0 %206 }
  0xa5   :  { %663 = vmatpush.msra.mxu0 %v1523_v43  ;;  %vm150_vm13 = vcmp.eq.s32.totalorder %v58_v41, %v1513_v39 }
  0xa7   :  { %664 = vmatpush.msra.mxu0 %v1429_v7  ;;  %v1557_v47 = vpop.permute.xlu1 %202  ;;  %v563_v7 = vsel %vm481_vm0, %v1449_v11, 0.0  ;;  %v1157_v11 = vsel %vm157_vm10, 1.0, %v1357_v40 }
  0xa8   :  { %1164 = vmatmul.msk.f32.vlgmr.msra.gmra.mxu0 %vm624_vm9, %v1527_v45 }
  0xaa   :  { %1267 = vset.pattern.permute.xlu0 %v1347_v3 }
  0xab   :  { %266 = vperm.xlu0 %1267, %v1458_v14  }
  0xac   :  { %1254 = vset.pattern.permute.xlu1 %v1341_v1  ;;  %1253 = vset.pattern.permute.xlu2 %v1354_v10  ;;  %v1549_v46 = vpop.permute.xlu0 %199 }
  0xad   :  { %238 = vperm.xlu1 %1254, %v1453_v12   ;;  %458 = vperm.xlu2 %1253, %v1458_v14  }
  0xb3   :  { %278 = vperm.xlu0 %1267, %v1480_v20  }
  0xb5   :  { %1257 = vset.pattern.permute.xlu1 %v1351_v6  ;;  %1255 = vset.pattern.permute.xlu2 %v1347_v3 }
  0xb6   :  { %334 = vperm.xlu1 %1257, %v1453_v12   ;;  %270 = vperm.xlu2 %1255, %v1453_v12  }
  0xbb   :  { %1276 = vset.pattern.permute.xlu0 %v1353_v9 }
  0xbc   :  { %438 = vperm.xlu0 %1276, %v1480_v20  }
  0xbe   :  { %1259 = vset.pattern.permute.xlu1 %v1350_v5  ;;  %1258 = vset.pattern.permute.xlu2 %v1352_v8 }
  0xbf   :  { %398 = vperm.xlu1 %1259, %v1453_v12   ;;  %366 = vperm.xlu2 %1258, %v1453_v12  }
  0xc4   :  { %1281 = vset.pattern.permute.xlu0 %v1351_v6 }
  0xc5   :  { %346 = vperm.xlu0 %1281, %v1549_v46  }
  0xc7   :  { %1263 = vset.pattern.permute.xlu1 %v1341_v1  ;;  %1260 = vset.pattern.permute.xlu2 %v1353_v9 }
  0xc8   :  { %242 = vperm.xlu1 %1263, %v1462_v15   ;;  %430 = vperm.xlu2 %1260, %v1453_v12  }
  0xcd   :  { %1286 = vset.pattern.permute.xlu0 %v1341_v1 }
  0xce   :  { %254 = vperm.xlu0 %1286, %v1557_v47  }
  0xcf   :  { %v263_v48 = vpop.permute.xlu2 %262 }
  0xd0   :  { %1265 = vset.pattern.permute.xlu1 %v1349_v4  ;;  %1264 = vset.pattern.permute.xlu2 %v1347_v3 }
  0xd1   :  { %306 = vperm.xlu1 %1265, %v1462_v15   ;;  %274 = vperm.xlu2 %1264, %v1462_v15  }
  0xd6   :  { %1291 = vset.pattern.permute.xlu0 %v1350_v5 }
  0xd7   :  { %414 = vperm.xlu0 %1291, %v1557_v47  }
  0xd8   :  { %v327_v49 = vpop.permute.xlu2 %326 }
  0xd9   :  { %1268 = vset.pattern.permute.xlu1 %v1350_v5  ;;  %1266 = vset.pattern.permute.xlu2 %v1351_v6 }
  0xda   :  { %402 = vperm.xlu1 %1268, %v1462_v15   ;;  %338 = vperm.xlu2 %1266, %v1462_v15  }
  0xdf   :  { %1294 = vset.pattern.permute.xlu0 %v1354_v10 }
  0xe2   :  { %1270 = vset.pattern.permute.xlu1 %v1354_v10  ;;  %1269 = vset.pattern.permute.xlu2 %v1353_v9  ;;  %v423_v50 = vpop.permute.xlu2 %422 }
  0xe3   :  { %466 = vperm.xlu1 %1270, %v1462_v15   ;;  %434 = vperm.xlu2 %1269, %v1462_v15  }
  0xe7   :  { %v231_v51 = vpop.permute.xlu1 %230 }
  0xe8   :  { %v483_v2 = vsel %vm481_vm0, %v231_v51, %v263_v48 }
  0xeb   :  { %1272 = vset.pattern.permute.xlu1 %v1349_v4  ;;  %1271 = vset.pattern.permute.xlu2 %v1341_v1 }
  0xec   :  { %310 = vperm.xlu1 %1272, %v1480_v20   ;;  %246 = vperm.xlu2 %1271, %v1480_v20   ;;  %v235_v52 = vpop.permute.xlu2 %234 }
  0xf0   :  { %v1580_v53 = vpop.permute.xlu0 %394 }
  0xf1   :  { %v295_v54 = vpop.permute.xlu1 %294 }
  0xf2   :  { %v492_v18 = vsel %vm490_vm1, %v483_v2, %v295_v54  ;;  %v698_v2 = vld [vmem:[%s1980_s2] sm:$0xff] }
  0xf4   :  { %1274 = vset.pattern.permute.xlu1 %v1352_v8  ;;  %1273 = vset.pattern.permute.xlu2 %v1351_v6 }
  0xf5   :  { %v299_v55 = vpop.permute.xlu2 %298  ;;  %374 = vperm.xlu1 %1274, %v1480_v20   ;;  %342 = vperm.xlu2 %1273, %v1480_v20  }
  0xf9   :  { %v1586_v56 = vpop.permute.xlu0 %302 }
  0xfa   :  { %v391_v57 = vpop.permute.xlu1 %390 }
  0xfd   :  { %1277 = vset.pattern.permute.xlu1 %v1354_v10  ;;  %1275 = vset.pattern.permute.xlu2 %v1350_v5 }
  0xfe   :  { %v363_v58 = vpop.permute.xlu2 %362  ;;  %470 = vperm.xlu1 %1277, %v1480_v20   ;;  %406 = vperm.xlu2 %1275, %v1480_v20   ;;  %v501_v20 = vsel %vm499_vm2, %v492_v18, %v327_v49 }
 0x101   :  { %576 = vadd.xlane.f32.xlu0 %v575_v59 }
 0x103   :  { %v455_v60 = vpop.permute.xlu1 %454  ;;  %v1594_v61 = vpop.permute.xlu0 %462 }
 0x106   :  { %1279 = vset.pattern.permute.xlu1 %v1347_v3  ;;  %1278 = vset.pattern.permute.xlu2 %v1341_v1 }
 0x107   :  { %v459_v63 = vpop.permute.xlu2 %458  ;;  %282 = vperm.xlu1 %1279, %v1549_v46   ;;  %250 = vperm.xlu2 %1278, %v1549_v46  }
 0x109   :  { %564 = vadd.xlane.f32.xlu0 %v563_v7 }
 0x10c   :  { %v359_v21 = vpop.permute.xlu0 %358 }
 0x10d   :  { %v510_v1 = vsel %vm508_vm3, %v501_v20, %v359_v21  ;;  %v331_v22 = vpop.permute.xlu1 %330 }
 0x10e   :  { %v519_v23 = vsel %vm517_vm4, %v510_v1, %v391_v57 }
 0x10f   :  { %v528_v25 = vsel %vm526_vm5, %v519_v23, %v423_v50  ;;  %1282 = vset.pattern.permute.xlu1 %v1352_v8  ;;  %1280 = vset.pattern.permute.xlu2 %v1349_v4  ;;  %v1158_v50 = vsel %vm158_vm12, 1.0, %v1357_v40 }
 0x110   :  { %378 = vperm.xlu1 %1282, %v1549_v46   ;;  %314 = vperm.xlu2 %1280, %v1549_v46   ;;  %v537_v26 = vsel %vm535_vm6, %v528_v25, %v455_v60  ;;  %v271_v27 = vpop.permute.xlu2 %270  ;;  %v699_v60 = vld [vmem:[%s1980_s2 + $0x8] sm:$0xff] }
 0x111   :  { %v545_v28 = vsel %vm149_vm11, %v537_v26, 0.0 }
 0x112   :  { %v1617_v29 = vadd.f32 %v1157_v11, %v545_v28 }
 0x114   :  { %1165 = vmatmul.msk.f32.gmra.mxu0 %vm624_vm9, %v1617_v29  ;;  %v1621_v31 = vpop.permute.xlu0 %370 }
 0x116   :  { %v427_v32 = vpop.permute.xlu1 %426 }
 0x118   :  { %1284 = vset.pattern.permute.xlu1 %v1353_v9  ;;  %1283 = vset.pattern.permute.xlu2 %v1350_v5 }
 0x119   :  { %442 = vperm.xlu1 %1284, %v1549_v46   ;;  %410 = vperm.xlu2 %1283, %v1549_v46   ;;  %v367_v36 = vpop.permute.xlu2 %366 }
 0x11d   :  { %v267_v37 = vpop.permute.xlu0 %266 }
 0x11e   :  { %v484_v38 = vsel %vm481_vm0, %v235_v52, %v267_v37 }
 0x11f   :  { %v493_v42 = vsel %vm490_vm1, %v484_v38, %v299_v55  ;;  %v239_v44 = vpop.permute.xlu1 %238 }
 0x120   :  { %v502_v48 = vsel %vm499_vm2, %v493_v42, %v331_v22  ;;  %v485_v62 = vsel %vm481_vm0, %v239_v44, %v271_v27 }
 0x121   :  { %v511_v5 = vsel %vm508_vm3, %v502_v48, %v363_v58  ;;  %1287 = vset.pattern.permute.xlu1 %v1347_v3  ;;  %1285 = vset.pattern.permute.xlu2 %v1354_v10  ;;  %v701_v58 = vld [vmem:[%s1980_s2 + $0x18] sm:$0xff]  ;;  %v494_v7 = vsel %vm490_vm1, %v485_v62, %v1586_v56  ;;  %v35_v62 = vadd.s32 40, %v1505_v34 }
 0x122   :  { %286 = vperm.xlu1 %1287, %v1557_v47   ;;  %474 = vperm.xlu2 %1285, %v1549_v46   ;;  %v520_v49 = vsel %vm517_vm4, %v511_v5, %v1580_v53  ;;  %v431_v54 = vpop.permute.xlu2 %430  ;;  %v700_v53 = vld [vmem:[%s1980_s2 + $0x10] sm:$0xff] }
 0x123   :  { %v529_v51 = vsel %vm526_vm5, %v520_v49, %v427_v32  ;;  %749 = vmatpush.msra.mxu1 %v701_v58  ;;  %1204 = vmatpush.msra.mxu2 %v701_v58  ;;  %vm161_vm10 = vcmp.eq.s32.totalorder %v35_v62, %v1507_v35 }
 0x124   :  { %v538_v52 = vsel %vm535_vm6, %v529_v51, %v459_v63  ;;  %1205 = vmatpush.msra.mxu3 %v701_v58  ;;  %v33_v63 = vadd.s32 24, %v1505_v34  ;;  %v569_v58 = vsel %vm481_vm0, %v1453_v12, 0.0 }
 0x125   :  { %v546_v55 = vsel %vm150_vm13, %v538_v52, 0.0  ;;  %v666_v3 = vpop.f32.mrf.mxu0  ;;  %750 = vmatpush.msra.mxu1 %v700_v53  ;;  %1206 = vmatpush.msra.mxu2 %v700_v53 }
 0x126   :  { %v1643_v57 = vadd.f32 %v1158_v50, %v546_v55  ;;  %690 = vst.msk [vmem:[#allocation2] sm:$0xff] %vm508_vm3, %v666_v3  ;;  %1207 = vmatpush.msra.mxu3 %v700_v53  ;;  %vm159_vm14 = vcmp.eq.s32.totalorder %v33_v63, %v1507_v35  ;;  %v279_v55 = vpop.permute.xlu0 %278  ;;  %v578_v53 = vsel %vm481_vm0, %v1549_v46, 0.0  ;;  %v572_v46 = vsel %vm481_vm0, %v1462_v15, 0.0 }
 0x127   :  { %751 = vmatpush.msra.mxu1 %v699_v60  ;;  %1208 = vmatpush.msra.mxu2 %v699_v60  ;;  %v1159_v22 = vsel %vm159_vm14, 1.0, %v1357_v40  ;;  %v566_v15 = vsel %vm481_vm0, %v1458_v14, 0.0 }
 0x128   :  { %v335_v59 = vpop.permute.xlu1 %334  ;;  %1166 = vmatmul.msk.f32.gmra.mxu0 %vm624_vm9, %v1643_v57  ;;  %1209 = vmatpush.msra.mxu3 %v699_v60 }
 0x129   :  { %752 = vmatpush.msra.mxu1 %v698_v2  ;;  %1210 = vmatpush.msra.mxu2 %v698_v2 }
 0x12a   :  { %1289 = vset.pattern.permute.xlu1 %v1351_v6  ;;  %1288 = vset.pattern.permute.xlu2 %v1349_v4  ;;  %v503_v6 = vsel %vm499_vm2, %v494_v7, %v335_v59  ;;  %v65_v4 = vand.u32 7, %v33_v63  ;;  %v560_v7 = vsel %vm481_vm0, %v1398_v0, 0.0 }
 0x12b   :  { %350 = vperm.xlu1 %1289, %v1557_v47   ;;  %318 = vperm.xlu2 %1288, %v1557_v47   ;;  %v275_v19 = vpop.permute.xlu2 %274  ;;  %v512_v21 = vsel %vm508_vm3, %v503_v6, %v367_v36 }
 0x12c   :  { %1211 = vmatpush.msra.mxu3 %v698_v2  ;;  %vm151_vm15 = vcmp.eq.s32.totalorder %v65_v4, %v1513_v39 }
 0x12d   :  { %v703_v18 = vld [vmem:[#allocation2] sm:$0xff] }
 0x12e   :  { %1172 = vmatmul.msk.f32.vlgmr.msra.gmra.mxu1 %vm508_vm3, %v703_v18  ;;  %v79_v18 = vand.u32 7, %v35_v62  ;;  %v439_v6 = vpop.permute.xlu0 %438 }
 0x130   :  { %vm153_vm11 = vcmp.eq.s32.totalorder %v79_v18, %v1513_v39 }
 0x131   :  { %v399_v20 = vpop.permute.xlu1 %398 }
 0x132   :  { %v521_v1 = vsel %vm517_vm4, %v512_v21, %v399_v20 }
 0x133   :  { %v530_v56 = vsel %vm526_vm5, %v521_v1, %v431_v54  ;;  %1292 = vset.pattern.permute.xlu1 %v1353_v9  ;;  %1290 = vset.pattern.permute.xlu2 %v1352_v8 }
 0x134   :  { %446 = vperm.xlu1 %1292, %v1557_v47   ;;  %382 = vperm.xlu2 %1290, %v1557_v47   ;;  %v539_v23 = vsel %vm535_vm6, %v530_v56, %v1594_v61  ;;  %v339_v26 = vpop.permute.xlu2 %338  ;;  %v34_v61 = vadd.s32 32, %v1505_v34 }
 0x135   :  { %v547_v25 = vsel %vm151_vm15, %v539_v23, 0.0 }
 0x136   :  { %v1682_v11 = vadd.f32 %v1159_v22, %v547_v25  ;;  %v72_v38 = vand.u32 7, %v34_v61  ;;  %vm160_vm7 = vcmp.eq.s32.totalorder %v34_v61, %v1507_v35 }
 0x137   :  { %v1160_v44 = vsel %vm160_vm7, 1.0, %v1357_v40 }
 0x138   :  { %1167 = vmatmul.msk.f32.gmra.mxu0 %vm624_vm9, %v1682_v11  ;;  %vm152_vm8 = vcmp.eq.s32.totalorder %v72_v38, %v1513_v39 }
 0x13a   :  { %v243_v27 = vpop.permute.xlu1 %242 }
 0x13b   :  { %v486_v28 = vsel %vm481_vm0, %v243_v27, %v275_v19  ;;  %v1161_v19 = vsel %vm161_vm10, 1.0, %v1357_v40  ;;  %v36_v27 = vadd.s32 48, %v1505_v34 }
 0x13c   :  { %1293 = vset.pattern.permute.xlu2 %v1354_v10 }
 0x13d   :  { %478 = vperm.xlu2 %1293, %v1557_v47   ;;  %v435_v8 = vpop.permute.xlu2 %434  ;;  %vm162_vm12 = vcmp.eq.s32.totalorder %v36_v27, %v1507_v35 }
 0x13e   :  { %v1162_v38 = vsel %vm162_vm12, 1.0, %v1357_v40 }
 0x143   :  { %v307_v9 = vpop.permute.xlu1 %306 }
 0x144   :  { %v495_v32 = vsel %vm490_vm1, %v486_v28, %v307_v9  ;;  %v347_v9 = vpop.permute.xlu0 %346 }
 0x145   :  { %v504_v37 = vsel %vm499_vm2, %v495_v32, %v339_v26  ;;  %v86_v32 = vand.u32 7, %v36_v27 }
 0x146   :  { %v247_v36 = vpop.permute.xlu2 %246  ;;  %v513_v41 = vsel %vm508_vm3, %v504_v37, %v1621_v31  ;;  %v581_v31 = vsel %vm481_vm0, %v1557_v47, 0.0 }
 0x147   :  { %v487_v3 = vsel %vm481_vm0, %v247_v36, %v279_v55  ;;  %vm154_vm13 = vcmp.eq.s32.totalorder %v86_v32, %v1513_v39  ;;  %v37_v55 = vadd.s32 56, %v1505_v34 }
 0x149   :  { %vm163_vm14 = vcmp.eq.s32.totalorder %v37_v55, %v1507_v35 }
 0x14c   :  { %v403_v33 = vpop.permute.xlu1 %402 }
 0x14d   :  { %v522_v10 = vsel %vm517_vm4, %v513_v41, %v403_v33 }
 0x14e   :  { %v531_v48 = vsel %vm526_vm5, %v522_v10, %v435_v8 }
 0x14f   :  { %v343_v49 = vpop.permute.xlu2 %342 }
 0x155   :  { %v467_v42 = vpop.permute.xlu1 %466 }
 0x156   :  { %v540_v5 = vsel %vm535_vm6, %v531_v48, %v467_v42 }
 0x157   :  { %v548_v50 = vsel %vm152_vm8, %v540_v5, 0.0 }
 0x158   :  { %v1700_v51 = vadd.f32 %v1160_v44, %v548_v50  ;;  %v407_v54 = vpop.permute.xlu2 %406  ;;  %v255_v50 = vpop.permute.xlu0 %254 }
 0x15a   :  { %1168 = vmatmul.msk.f32.gmra.mxu0 %vm624_vm9, %v1700_v51 }
 0x15e   :  { %v311_v52 = vpop.permute.xlu1 %310  ;;  %582 = vadd.xlane.f32.xlu1 %v581_v31 }
 0x15f   :  { %v496_v59 = vsel %vm490_vm1, %v487_v3, %v311_v52 }
 0x160   :  { %v505_v47 = vsel %vm499_vm2, %v496_v59, %v343_v49 }
 0x161   :  { %v251_v2 = vpop.permute.xlu2 %250 }
 0x166   :  { %570 = vadd.xlane.f32.xlu1 %v569_v58  ;;  %579 = vadd.xlane.f32.xlu2 %v578_v53  ;;  %v93_v53 = vand.u32 7, %v37_v55 }
 0x167   :  { %v375_v60 = vpop.permute.xlu1 %374 }
 0x168   :  { %v514_v63 = vsel %vm508_vm3, %v505_v47, %v375_v60  ;;  %v415_v60 = vpop.permute.xlu0 %414 }
 0x169   :  { %v523_v12 = vsel %vm517_vm4, %v514_v63, %v407_v54 }
 0x16a   :  { %v532_v20 = vsel %vm526_vm5, %v523_v12, %v439_v6  ;;  %v315_v56 = vpop.permute.xlu2 %314 }
 0x16e   :  { %573 = vadd.xlane.f32.xlu2 %v572_v46  ;;  %561 = vadd.xlane.f32.xlu1 %v560_v7  ;;  %v1163_v7 = vsel %vm163_vm14, 1.0, %v1357_v40 }
 0x170   :  { %v471_v4 = vpop.permute.xlu1 %470 }
 0x171   :  { %v541_v0 = vsel %vm535_vm6, %v532_v20, %v471_v4 }
 0x172   :  { %v549_v21 = vsel %vm153_vm11, %v541_v0, 0.0 }
 0x173   :  { %v1725_v1 = vadd.f32 %v1161_v19, %v549_v21  ;;  %v411_v23 = vpop.permute.xlu2 %410 }
 0x175   :  { %1169 = vmatmul.msk.f32.gmra.mxu0 %vm624_vm9, %v1725_v1 }
 0x176   :  { %567 = vadd.xlane.f32.xlu2 %v566_v15 }
 0x179   :  { %v283_v22 = vpop.permute.xlu1 %282 }
 0x17a   :  { %v488_v25 = vsel %vm481_vm0, %v251_v2, %v283_v22 }
 0x17b   :  { %v497_v8 = vsel %vm490_vm1, %v488_v25, %v315_v56  ;;  %v702_v56 = vld [vmem:[%s1981_s3] sm:$0x1] }
 0x17c   :  { %v506_v28 = vsel %vm499_vm2, %v497_v8, %v347_v9  ;;  %v475_v61 = vpop.permute.xlu2 %474  ;;  %v711_v15 = vmul.f32 2.0, %v702_v56 }
 0x182   :  { %v379_v26 = vpop.permute.xlu1 %378 }
 0x183   :  { %v515_v33 = vsel %vm508_vm3, %v506_v28, %v379_v26 }
 0x184   :  { %v524_v36 = vsel %vm517_vm4, %v515_v33, %v411_v23  ;;  %v1774_v23 = vperm.slane %v711_v15, 0 }
 0x185   :  { %v319_v48 = vpop.permute.xlu2 %318 }
 0x18b   :  { %v443_v14 = vpop.permute.xlu1 %442 }
 0x18c   :  { %v533_v37 = vsel %vm526_vm5, %v524_v36, %v443_v14 }
 0x18d   :  { %v542_v41 = vsel %vm535_vm6, %v533_v37, %v475_v61  ;;  %v577_v61 = vpop.xlane.xlu0 %576 }
 0x18e   :  { %v550_v10 = vsel %vm154_vm13, %v542_v41, 0.0  ;;  %v383_v52 = vpop.permute.xlu2 %382 }
 0x18f   :  { %v1742_v42 = vadd.f32 %v1162_v38, %v550_v10 }
 0x191   :  { %v669_v44 = vpop.f32.mrf.mxu0  ;;  %1170 = vmatmul.msk.f32.gmra.mxu0 %vm624_vm9, %v1742_v42 }
 0x192   :  { %691 = vst.msk [vmem:[#allocation2 + $0x8] sm:$0xff] %vm508_vm3, %v669_v44 }
 0x194   :  { %v287_v5 = vpop.permute.xlu1 %286 }
 0x195   :  { %v489_v31 = vsel %vm481_vm0, %v255_v50, %v287_v5  ;;  %vm155_vm0 = vcmp.eq.s32.totalorder %v93_v53, %v1513_v39  ;;  %v565_v36 = vpop.xlane.xlu0 %564 }
 0x196   :  { %v498_v3 = vsel %vm490_vm1, %v489_v31, %v319_v48  ;;  %v585_v38 = vadd.f32 1.0, %v565_v36  ;;  %v589_v36 = vadd.f32 1.0, %v577_v61 }
 0x197   :  { %v479_v2 = vpop.permute.xlu2 %478 }
 0x199   :  { %v704_v49 = vld [vmem:[#allocation2 + $0x8] sm:$0xff] }
 0x19a   :  { %1173 = vmatmul.msk.f32.gmra.mxu1 %vm508_vm3, %v704_v49 }
 0x19d   :  { %v351_v54 = vpop.permute.xlu1 %350 }
 0x19e   :  { %v507_v58 = vsel %vm499_vm2, %v498_v3, %v351_v54  ;;  %vm1014_vm2 = vcmask 261248  }
 0x19f   :  { %v516_v59 = vsel %vm508_vm3, %v507_v58, %v383_v52 }
 0x1a0   :  { %v525_v63 = vsel %vm517_vm4, %v516_v59, %v415_v60  ;;  %vm1133_vm4 = vcmask 785408  }
 0x1a5   :  { %v672_v62 = vpop.f32.mrf.mxu0 }
 0x1a6   :  { %692 = vst.msk [vmem:[#allocation2 + $0x10] sm:$0xff] %vm508_vm3, %v672_v62  ;;  %v447_v47 = vpop.permute.xlu1 %446 }
 0x1a7   :  { %v534_v34 = vsel %vm526_vm5, %v525_v63, %v447_v47 }
 0x1a8   :  { %v543_v18 = vsel %vm535_vm6, %v534_v34, %v479_v2 }
 0x1a9   :  { %v551_v12 = vsel %vm155_vm0, %v543_v18, 0.0 }
 0x1aa   :  { %v1760_v46 = vadd.f32 %v1163_v7, %v551_v12 }
 0x1ab   :  { %v754_v26 = vpop.f32.mrf.mxu1 }
 0x1ac   :  { %1171 = vmatmul.msk.f32.gmra.mxu0 %vm624_vm9, %v1760_v46  ;;  %v755_v8 = vadd.f32 %v754_v26, %v1774_v23 }
 0x1ad   :  { %v705_v35 = vld [vmem:[#allocation2 + $0x10] sm:$0xff] }
 0x1ae   :  { %1174 = vmatmul.msk.f32.gmra.mxu1 %vm508_vm3, %v705_v35 }
 0x1b5   :  { %v675_v6 = vpop.f32.mrf.mxu0 }
 0x1b6   :  { %693 = vst.msk [vmem:[#allocation2 + $0x18] sm:$0xff] %vm508_vm3, %v675_v6 }
 0x1bd   :  { %v706_v39 = vld [vmem:[#allocation2 + $0x18] sm:$0xff] }
 0x1be   :  { %1175 = vmatmul.msk.f32.vlgmr.msra.gmra.mxu2 %vm508_vm3, %v706_v39 }
 0x1d1   :  { %v1767_v4 = vpop.xlane.xlu1 %582 }
 0x1d7   :  { %v678_v40 = vpop.f32.mrf.mxu0 }
 0x1d8   :  { %694 = vst.msk [vmem:[#allocation2 + $0x20] sm:$0xff] %vm508_vm3, %v678_v40 }
 0x1d9   :  { %v571_v19 = vpop.xlane.xlu1 %570  ;;  %v1788_v37 = vpop.xlane.xlu2 %579 }
 0x1da   :  { %v587_v34 = vadd.f32 1.0, %v571_v19 }
 0x1df   :  { %v707_v20 = vld [vmem:[#allocation2 + $0x20] sm:$0xff] }
 0x1e0   :  { %1176 = vmatmul.msk.f32.gmra.mxu2 %vm508_vm3, %v707_v20 }
 0x1e1   :  { %v562_v0 = vpop.xlane.xlu1 %561  ;;  %v574_v41 = vpop.xlane.xlu2 %573 }
 0x1e2   :  { %v584_v21 = vadd.f32 1.0, %v562_v0  ;;  %v588_v56 = vadd.f32 1.0, %v574_v41 }
 0x1e4   :  { %1296 = vrcp.f32 %v584_v21 }
 0x1e5   :  { %1298 = vrcp.f32 %v585_v38 }
 0x1e9   :  { %v568_v49 = vpop.xlane.xlu2 %567 }
 0x1ea   :  { %v1297_v22 = vpop.eup %1296  ;;  %v586_v31 = vadd.f32 1.0, %v568_v49 }
 0x1eb   :  { %v600_v25 = vmul.f32 %v1297_v22, %v584_v21  ;;  %v1299_v10 = vpop.eup %1298 }
 0x1ec   :  { %v601_v48 = vmul.f32 %v1299_v10, %v585_v38  ;;  %1300 = vrcp.f32 %v586_v31 }
 0x1ed   :  { %v608_v27 = vsub.f32 2.0, %v600_v25  ;;  %1302 = vrcp.f32 %v587_v34 }
 0x1ee   :  { %v609_v5 = vsub.f32 2.0, %v601_v48  ;;  %1304 = vrcp.f32 %v588_v56 }
 0x1ef   :  { %v1777_v9 = vmul.f32 %v1297_v22, %v608_v27  ;;  %1306 = vrcp.f32 %v589_v36 }
 0x1f0   :  { %v1793_v55 = vmul.f32 %v1299_v10, %v609_v5 }
 0x1f1   :  { %v1780_v32 = vmul.f32 %v755_v8, %v1777_v9 }
 0x1f2   :  { %v681_v28 = vpop.f32.mrf.mxu0  ;;  %v1301_v53 = vpop.eup %1300 }
 0x1f3   :  { %695 = vst.msk [vmem:[#allocation2 + $0x28] sm:$0xff] %vm508_vm3, %v681_v28  ;;  %v786_v33 = vmax.f32 %v1780_v32, 0.0  ;;  %v602_v59 = vmul.f32 %v1301_v53, %v586_v31  ;;  %v1303_v35 = vpop.eup %1302  ;;  %v590_v31 = vadd.f32 1.0, %v1788_v37  ;;  %v887_v32 = vld [vmem:[%s1980_s2 + $0x38] sm:$0xff] }
 0x1f4   :  { %v603_v6 = vmul.f32 %v1303_v35, %v587_v34  ;;  %v1305_v15 = vpop.eup %1304 }
 0x1f5   :  { %794 = vst.msk [vmem:[#allocation3] sm:$0xff] %vm490_vm1, %v786_v33  ;;  %v610_v60 = vsub.f32 2.0, %v602_v59  ;;  %v604_v22 = vmul.f32 %v1305_v15, %v588_v56  ;;  %v1307_v38 = vpop.eup %1306  ;;  %1308 = vrcp.f32 %v590_v31 }
 0x1f6   :  { %v611_v39 = vsub.f32 2.0, %v603_v6  ;;  %v605_v10 = vmul.f32 %v1307_v38, %v589_v36 }
 0x1f7   :  { %v1804_v2 = vmul.f32 %v1301_v53, %v610_v60  ;;  %v612_v25 = vsub.f32 2.0, %v604_v22 }
 0x1f8   :  { %v1813_v0 = vmul.f32 %v1303_v35, %v611_v39 }
 0x1f9   :  { %v1818_v8 = vmul.f32 %v1305_v15, %v612_v25 }
 0x1fa   :  { %v708_v14 = vld [vmem:[#allocation2 + $0x28] sm:$0xff] }
 0x1fb   :  { %1177 = vmatmul.msk.f32.vlgmr.msra.gmra.mxu3 %vm508_vm3, %v708_v14  ;;  %v1309_v61 = vpop.eup %1308 }
 0x20e   :  { %v684_v44 = vpop.f32.mrf.mxu0 }
 0x20f   :  { %696 = vst.msk [vmem:[#allocation2 + $0x30] sm:$0xff] %vm508_vm3, %v684_v44  ;;  %v613_v44 = vsub.f32 2.0, %v605_v10 }
 0x211   :  { %v1823_v5 = vmul.f32 %v1307_v38, %v613_v44 }
 0x216   :  { %v709_v50 = vld [vmem:[#allocation2 + $0x30] sm:$0xff] }
 0x217   :  { %v757_v52 = vpop.f32.mrf.mxu1  ;;  %1178 = vmatmul.msk.f32.gmra.mxu3 %vm508_vm3, %v709_v50 }
 0x218   :  { %v758_v54 = vadd.f32 %v757_v52, %v1774_v23  ;;  %v606_v52 = vmul.f32 %v1309_v61, %v590_v31 }
 0x21a   :  { %v1796_v3 = vmul.f32 %v758_v54, %v1793_v55  ;;  %v614_v54 = vsub.f32 2.0, %v606_v52 }
 0x21c   :  { %v787_v58 = vmax.f32 %v1796_v3, 0.0  ;;  %v1829_v60 = vmul.f32 %v1309_v61, %v614_v54  ;;  %v885_v3 = vld [vmem:[%s1980_s2 + $0x28] sm:$0xff] }
 0x21e   :  { %795 = vst.msk [vmem:[#allocation3 + $0x8] sm:$0xff] %vm490_vm1, %v787_v58 }
 0x229   :  { %v687_v62 = vpop.f32.mrf.mxu0 }
 0x22a   :  { %697 = vst.msk [vmem:[#allocation2 + $0x38] sm:$0xff] %vm508_vm3, %v687_v62 }
 0x22b   :  { %v760_v47 = vpop.f32.mrf.mxu1 }
 0x22c   :  { %v761_v63 = vadd.f32 %v760_v47, %v1774_v23 }
 0x22e   :  { %v1807_v7 = vmul.f32 %v761_v63, %v1804_v2  ;;  %v591_v63 = vadd.f32 1.0, %v1767_v4 }
 0x230   :  { %v788_v18 = vmax.f32 %v1807_v7, 0.0  ;;  %1310 = vrcp.f32 %v591_v63 }
 0x231   :  { %v710_v12 = vld [vmem:[#allocation2 + $0x38] sm:$0xff] }
 0x232   :  { %1179 = vmatmul.msk.f32.gmra.mxu3 %vm508_vm3, %v710_v12  ;;  %796 = vst.msk [vmem:[#allocation3 + $0x10] sm:$0xff] %vm490_vm1, %v788_v18 }
 0x236   :  { %v1311_v34 = vpop.eup %1310 }
 0x237   :  { %v607_v7 = vmul.f32 %v1311_v34, %v591_v63 }
 0x239   :  { %v615_v37 = vsub.f32 2.0, %v607_v7 }
 0x23b   :  { %v1835_v6 = vmul.f32 %v1311_v34, %v615_v37 }
 0x241   :  { %v763_v40 = vpop.f32.mrf.mxu2 }
 0x242   :  { %v764_v20 = vadd.f32 %v763_v40, %v1774_v23 }
 0x244   :  { %v781_v19 = vmul.f32 %v764_v20, %v1813_v0 }
 0x246   :  { %v789_v21 = vmax.f32 %v781_v19, 0.0 }
 0x248   :  { %797 = vst.msk [vmem:[#allocation3 + $0x18] sm:$0xff] %vm490_vm1, %v789_v21 }
 0x263   :  { %v766_v26 = vpop.f32.mrf.mxu2 }
 0x264   :  { %v767_v27 = vadd.f32 %v766_v26, %v1774_v23 }
 0x266   :  { %v782_v28 = vmul.f32 %v767_v27, %v1818_v8 }
 0x268   :  { %v790_v14 = vmax.f32 %v782_v28, 0.0 }
 0x26a   :  { %798 = vst.msk [vmem:[#allocation3 + $0x20] sm:$0xff] %vm490_vm1, %v790_v14 }
 0x27e   :  { %v769_v41 = vpop.f32.mrf.mxu3 }
 0x27f   :  { %v770_v48 = vadd.f32 %v769_v41, %v1774_v23  ;;  %v890_v41 = vld [vmem:[%s1981_s3 + $0x1] sm:$0x1] }
 0x281   :  { %v783_v49 = vmul.f32 %v770_v48, %v1823_v5  ;;  %v899_v48 = vmul.f32 2.0, %v890_v41 }
 0x283   :  { %v791_v50 = vmax.f32 %v783_v49, 0.0  ;;  %v900_v49 = vperm.slane %v899_v48, 0 }
 0x285   :  { %799 = vst.msk [vmem:[#allocation3 + $0x28] sm:$0xff] %vm490_vm1, %v791_v50 }
 0x29a   :  { %v772_v53 = vpop.f32.mrf.mxu3 }
 0x29b   :  { %v773_v59 = vadd.f32 %v772_v53, %v1774_v23 }
 0x29d   :  { %v784_v62 = vmul.f32 %v773_v59, %v1829_v60 }
 0x29f   :  { %v792_v47 = vmax.f32 %v784_v62, 0.0 }
 0x2a1   :  { %800 = vst.msk [vmem:[#allocation3 + $0x30] sm:$0xff] %vm490_vm1, %v792_v47 }
 0x2b5   :  { %v775_v12 = vpop.f32.mrf.mxu3 }
 0x2b6   :  { %v776_v35 = vadd.f32 %v775_v12, %v1774_v23 }
 0x2b8   :  { %v785_v39 = vmul.f32 %v776_v35, %v1835_v6 }
 0x2ba   :  { %v793_v40 = vmax.f32 %v785_v39, 0.0 }
 0x2bc   :  { %801 = vst.msk [vmem:[#allocation3 + $0x38] sm:$0xff] %vm490_vm1, %v793_v40  ;;  %810 = vmatpush.msrb.mxu2 %v793_v40  ;;  %vm875_vm1 = vcmask 392448  }
 0x2be   :  { %811 = vmatpush.msrb.mxu2 %v792_v47 }
 0x2c0   :  { %812 = vmatpush.msrb.mxu2 %v791_v50 }
 0x2c2   :  { %813 = vmatpush.msrb.mxu2 %v790_v14 }
 0x2c4   :  { %814 = vmatpush.msrb.mxu2 %v789_v21 }
 0x2c6   :  { %815 = vmatpush.msrb.mxu2 %v788_v18 }
 0x2c8   :  { %816 = vmatpush.msrb.mxu2 %v787_v58  ;;  %v884_v58 = vld [vmem:[%s1980_s2 + $0x20] sm:$0xff] }
 0x2ca   :  { %817 = vmatpush.msrb.mxu2 %v786_v33  ;;  %v886_v33 = vld [vmem:[%s1980_s2 + $0x30] sm:$0xff] }
 0x2cb   :  { %1180 = vmatmul.msk.f32.vlgmr.msrb.gmra.mxu2 %vm624_vm9, %v1527_v45 }
 0x2d3   :  { %1181 = vmatmul.msk.f32.gmra.mxu2 %vm624_vm9, %v1617_v29 }
 0x2db   :  { %1182 = vmatmul.msk.f32.gmra.mxu2 %vm624_vm9, %v1643_v57 }
 0x2e3   :  { %1183 = vmatmul.msk.f32.gmra.mxu2 %vm624_vm9, %v1682_v11 }
 0x2eb   :  { %1184 = vmatmul.msk.f32.gmra.mxu2 %vm624_vm9, %v1700_v51  ;;  %v889_v51 = vld [vmem:[%s1980_s2 + $0x48] sm:$0xff] }
 0x2ec   :  { %935 = vmatpush.msrb.mxu3 %v889_v51 }
 0x2f3   :  { %1185 = vmatmul.msk.f32.gmra.mxu2 %vm624_vm9, %v1725_v1  ;;  %v888_v1 = vld [vmem:[%s1980_s2 + $0x40] sm:$0xff] }
 0x2f4   :  { %936 = vmatpush.msrb.mxu3 %v888_v1 }
 0x2f6   :  { %937 = vmatpush.msrb.mxu3 %v887_v32  ;;  %v26_v32 = vld [vmem:[%s1982_s4 + $0x10] sm:$0xff] }
 0x2f8   :  { %938 = vmatpush.msrb.mxu3 %v886_v33 }
 0x2fa   :  { %939 = vmatpush.msrb.mxu3 %v885_v3 }
 0x2fb   :  { %1186 = vmatmul.msk.f32.gmra.mxu2 %vm624_vm9, %v1742_v42 }
 0x2fc   :  { %940 = vmatpush.msrb.mxu3 %v884_v58  ;;  %v1312_v58 = vld [vmem:[%s1979_s1] sm:$0xff] }
 0x303   :  { %1187 = vmatmul.msk.f32.gmra.mxu2 %vm624_vm9, %v1760_v46 }
 0x34e   :  { %v819_v45 = vpop.f32.mrf.mxu2 }
 0x34f   :  { %851 = vrot.lane.b32.xlu2 %v819_v45, %s1343_s27 }
 0x356   :  { %v822_v29 = vpop.f32.mrf.mxu2 }
 0x357   :  { %853 = vrot.lane.b32.xlu0 %v822_v29, %s1343_s27 }
 0x35e   :  { %v825_v57 = vpop.f32.mrf.mxu2 }
 0x35f   :  { %855 = vrot.lane.b32.xlu1 %v825_v57, %s1343_s27 }
 0x366   :  { %v828_v11 = vpop.f32.mrf.mxu2 }
 0x367   :  { %857 = vrot.lane.b32.xlu0 %v828_v11, %s1343_s27 }
 0x36e   :  { %v831_v42 = vpop.f32.mrf.mxu2 }
 0x36f   :  { %859 = vrot.lane.b32.xlu2 %v831_v42, %s1343_s27 }
 0x376   :  { %v834_v46 = vpop.f32.mrf.mxu2 }
 0x377   :  { %861 = vrot.lane.b32.xlu1 %v834_v46, %s1343_s27 }
 0x37e   :  { %v837_v4 = vpop.f32.mrf.mxu2 }
 0x37f   :  { %863 = vrot.lane.b32.xlu0 %v837_v4, %s1343_s27 }
 0x386   :  { %v840_v23 = vpop.f32.mrf.mxu2 }
 0x387   :  { %865 = vrot.lane.b32.xlu2 %v840_v23, %s1343_s27 }
 0x3a9   :  { %v852_v18 = vpop.permute.xlu2 %851 }
 0x3aa   :  { %876 = vst.msk [vmem:[#allocation2] sm:$0xff] %vm875_vm1, %v852_v18 }
 0x3b1   :  { %v891_v20 = vld [vmem:[#allocation2] sm:$0xff] }
 0x3b2   :  { %1188 = vmatmul.msk.f32.vlgmr.msrb.gmra.mxu3 %vm526_vm5, %v891_v20 }
 0x3c9   :  { %v854_v19 = vpop.permute.xlu0 %853  ;;  %v860_v21 = vpop.permute.xlu2 %859 }
 0x3ca   :  { %877 = vst.msk [vmem:[#allocation2 + $0x8] sm:$0xff] %vm875_vm1, %v854_v19 }
 0x3cb   :  { %880 = vst.msk [vmem:[#allocation2 + $0x20] sm:$0xff] %vm875_vm1, %v860_v21 }
 0x3d1   :  { %v856_v56 = vpop.permute.xlu1 %855  ;;  %v892_v15 = vld [vmem:[#allocation2 + $0x8] sm:$0xff] }
 0x3d2   :  { %878 = vst.msk [vmem:[#allocation2 + $0x10] sm:$0xff] %vm875_vm1, %v856_v56  ;;  %1189 = vmatmul.msk.f32.gmra.mxu3 %vm526_vm5, %v892_v15  ;;  %v895_v14 = vld [vmem:[#allocation2 + $0x20] sm:$0xff] }
 0x3d9   :  { %v858_v22 = vpop.permute.xlu0 %857  ;;  %v893_v25 = vld [vmem:[#allocation2 + $0x10] sm:$0xff] }
 0x3da   :  { %879 = vst.msk [vmem:[#allocation2 + $0x18] sm:$0xff] %vm875_vm1, %v858_v22  ;;  %1190 = vmatmul.msk.f32.gmra.mxu3 %vm526_vm5, %v893_v25 }
 0x3e1   :  { %v866_v26 = vpop.permute.xlu2 %865  ;;  %v894_v27 = vld [vmem:[#allocation2 + $0x18] sm:$0xff] }
 0x3e2   :  { %883 = vst.msk [vmem:[#allocation2 + $0x38] sm:$0xff] %vm875_vm1, %v866_v26  ;;  %1191 = vmatmul.msk.f32.gmra.mxu3 %vm526_vm5, %v894_v27 }
 0x3e9   :  { %v862_v28 = vpop.permute.xlu1 %861  ;;  %v898_v44 = vld [vmem:[#allocation2 + $0x38] sm:$0xff] }
 0x3ea   :  { %881 = vst.msk [vmem:[#allocation2 + $0x28] sm:$0xff] %vm875_vm1, %v862_v28  ;;  %1192 = vmatmul.msk.f32.gmra.mxu3 %vm526_vm5, %v895_v14 }
 0x3f1   :  { %v864_v36 = vpop.permute.xlu0 %863  ;;  %v896_v38 = vld [vmem:[#allocation2 + $0x28] sm:$0xff] }
 0x3f2   :  { %882 = vst.msk [vmem:[#allocation2 + $0x30] sm:$0xff] %vm875_vm1, %v864_v36  ;;  %1193 = vmatmul.msk.f32.gmra.mxu3 %vm526_vm5, %v896_v38 }
 0x3f9   :  { %v897_v10 = vld [vmem:[#allocation2 + $0x30] sm:$0xff] }
 0x3fa   :  { %1194 = vmatmul.msk.f32.gmra.mxu3 %vm526_vm5, %v897_v10 }
 0x402   :  { %1195 = vmatmul.msk.f32.gmra.mxu3 %vm526_vm5, %v898_v44 }
 0x435   :  { %v942_v50 = vpop.f32.mrf.mxu3 }
 0x436   :  { %v943_v31 = vadd.f32 %v942_v50, %v900_v49 }
 0x438   :  { %v966_v61 = vmul.f32 %v943_v31, %v1777_v9 }
 0x43a   :  { %v974_v52 = vmax.f32 %v966_v61, 0.0 }
 0x43c   :  { %990 = vrot.lane.b32.xlu1 %v974_v52, %s1358_s12 }
 0x455   :  { %v945_v54 = vpop.f32.mrf.mxu3 }
 0x456   :  { %v946_v53 = vadd.f32 %v945_v54, %v900_v49 }
 0x458   :  { %v967_v59 = vmul.f32 %v946_v53, %v1793_v55 }
 0x45a   :  { %v975_v62 = vmax.f32 %v967_v59, 0.0 }
 0x45c   :  { %992 = vrot.lane.b32.xlu0 %v975_v62, %s1358_s12 }
 0x45d   :  { %v948_v47 = vpop.f32.mrf.mxu3 }
 0x45e   :  { %v949_v63 = vadd.f32 %v948_v47, %v900_v49 }
 0x460   :  { %v968_v34 = vmul.f32 %v949_v63, %v1804_v2 }
 0x462   :  { %v976_v7 = vmax.f32 %v968_v34, 0.0 }
 0x464   :  { %994 = vrot.lane.b32.xlu2 %v976_v7, %s1358_s12 }
 0x465   :  { %v951_v37 = vpop.f32.mrf.mxu3 }
 0x466   :  { %v952_v9 = vadd.f32 %v951_v37, %v900_v49 }
 0x468   :  { %v969_v12 = vmul.f32 %v952_v9, %v1813_v0 }
 0x46a   :  { %v977_v35 = vmax.f32 %v969_v12, 0.0 }
 0x46c   :  { %996 = vrot.lane.b32.xlu1 %v977_v35, %s1358_s12 }
 0x46d   :  { %v954_v39 = vpop.f32.mrf.mxu3 }
 0x46e   :  { %v955_v40 = vadd.f32 %v954_v39, %v900_v49 }
 0x470   :  { %v970_v55 = vmul.f32 %v955_v40, %v1818_v8 }
 0x472   :  { %v978_v45 = vmax.f32 %v970_v55, 0.0 }
 0x474   :  { %998 = vrot.lane.b32.xlu0 %v978_v45, %s1358_s12 }
 0x475   :  { %v957_v29 = vpop.f32.mrf.mxu3 }
 0x476   :  { %v958_v57 = vadd.f32 %v957_v29, %v900_v49 }
 0x478   :  { %v971_v2 = vmul.f32 %v958_v57, %v1823_v5  ;;  %v27_v5 = vld [vmem:[%s1982_s4 + $0x18] sm:$0xff] }
 0x479   :  { %1078 = vmatpush.msrb.mxu1 %v27_v5 }
 0x47a   :  { %v979_v11 = vmax.f32 %v971_v2, 0.0 }
 0x47b   :  { %1079 = vmatpush.msrb.mxu1 %v26_v32 }
 0x47c   :  { %1000 = vrot.lane.b32.xlu2 %v979_v11, %s1358_s12 }
 0x47d   :  { %v960_v51 = vpop.f32.mrf.mxu3 }
 0x47e   :  { %v961_v1 = vadd.f32 %v960_v51, %v900_v49 }
 0x480   :  { %v972_v0 = vmul.f32 %v961_v1, %v1829_v60  ;;  %v25_v60 = vld [vmem:[%s1982_s4 + $0x8] sm:$0xff] }
 0x481   :  { %1080 = vmatpush.msrb.mxu1 %v25_v60 }
 0x482   :  { %v980_v42 = vmax.f32 %v972_v0, 0.0 }
 0x484   :  { %1002 = vrot.lane.b32.xlu1 %v980_v42, %s1358_s12 }
 0x485   :  { %v963_v46 = vpop.f32.mrf.mxu3 }
 0x486   :  { %v964_v4 = vadd.f32 %v963_v46, %v900_v49 }
 0x488   :  { %v973_v8 = vmul.f32 %v964_v4, %v1835_v6  ;;  %v24_v6 = vld [vmem:[%s1982_s4] sm:$0xff] }
 0x489   :  { %1081 = vmatpush.msrb.mxu1 %v24_v6 }
 0x48a   :  { %v981_v23 = vmax.f32 %v973_v8, 0.0 }
 0x48c   :  { %1004 = vrot.lane.b32.xlu0 %v981_v23, %s1358_s12 }
 0x4ae   :  { %v991_v33 = vpop.permute.xlu1 %990 }
 0x4af   :  { %1015 = vst.msk [vmem:[#allocation3] sm:$0xff] %vm1014_vm2, %v991_v33 }
 0x4b6   :  { %v1023_v3 = vld [vmem:[#allocation3] sm:$0xff] }
 0x4b7   :  { %v1031_v18 = vadd.f32 %v1312_v58, %v1023_v3 }
 0x4b9   :  { %1196 = vmatmul.msk.f32.vlgmr.msrb.gmra.mxu1 %vm508_vm3, %v1031_v18 }
 0x4be   :  { %v995_v20 = vpop.permute.xlu2 %994 }
 0x4bf   :  { %1017 = vst.msk [vmem:[#allocation3 + $0x10] sm:$0xff] %vm1014_vm2, %v995_v20 }
 0x4c6   :  { %v1025_v22 = vld [vmem:[#allocation3 + $0x10] sm:$0xff] }
 0x4c7   :  { %v1033_v26 = vadd.f32 %v1025_v22, %v1501_v30 }
 0x4ce   :  { %v993_v19 = vpop.permute.xlu0 %992 }
 0x4cf   :  { %1016 = vst.msk [vmem:[#allocation3 + $0x8] sm:$0xff] %vm1014_vm2, %v993_v19 }
 0x4d6   :  { %v1001_v21 = vpop.permute.xlu2 %1000  ;;  %v1024_v56 = vld [vmem:[#allocation3 + $0x8] sm:$0xff] }
 0x4d7   :  { %1020 = vst.msk [vmem:[#allocation3 + $0x28] sm:$0xff] %vm1014_vm2, %v1001_v21  ;;  %v1032_v15 = vadd.f32 %v1024_v56, %v1523_v43  ;;  %v1313_v43 = vld [vmem:[%s1979_s1 + $0x8] sm:$0xff] }
 0x4d9   :  { %1197 = vmatmul.msk.f32.gmra.mxu1 %vm508_vm3, %v1032_v15 }
 0x4de   :  { %v997_v25 = vpop.permute.xlu1 %996  ;;  %v1028_v10 = vld [vmem:[#allocation3 + $0x28] sm:$0xff] }
 0x4df   :  { %1018 = vst.msk [vmem:[#allocation3 + $0x18] sm:$0xff] %vm1014_vm2, %v997_v25  ;;  %v1036_v44 = vadd.f32 %v1028_v10, %v1470_v17  ;;  %v1295_v17 = vld [vmem:[%s1983_s5] ss:$0 sm:$0xff]  ;;  %s1359_s5 = smov [#allocation4]  }
 0x4e1   :  { %1198 = vmatmul.msk.f32.gmra.mxu1 %vm508_vm3, %v1033_v26 }
 0x4e6   :  { %v999_v27 = vpop.permute.xlu0 %998  ;;  %v1026_v28 = vld [vmem:[#allocation3 + $0x18] sm:$0xff] }
 0x4e7   :  { %1019 = vst.msk [vmem:[#allocation3 + $0x20] sm:$0xff] %vm1014_vm2, %v999_v27  ;;  %v1034_v14 = vadd.f32 %v1026_v28, %v1489_v24 }
 0x4e9   :  { %1199 = vmatmul.msk.f32.gmra.mxu1 %vm508_vm3, %v1034_v14 }
 0x4ee   :  { %v1027_v36 = vld [vmem:[#allocation3 + $0x20] sm:$0xff] }
 0x4ef   :  { %v1035_v38 = vadd.f32 %v1313_v43, %v1027_v36 }
 0x4f1   :  { %1200 = vmatmul.msk.f32.gmra.mxu1 %vm508_vm3, %v1035_v38 }
 0x4f6   :  { %v1003_v30 = vpop.permute.xlu1 %1002 }
 0x4f7   :  { %1021 = vst.msk [vmem:[#allocation3 + $0x30] sm:$0xff] %vm1014_vm2, %v1003_v30 }
 0x4f9   :  { %1201 = vmatmul.msk.f32.gmra.mxu1 %vm508_vm3, %v1036_v44 }
 0x4fe   :  { %v1005_v41 = vpop.permute.xlu0 %1004  ;;  %v1029_v24 = vld [vmem:[#allocation3 + $0x30] sm:$0xff] }
 0x4ff   :  { %1022 = vst.msk [vmem:[#allocation3 + $0x38] sm:$0xff] %vm1014_vm2, %v1005_v41  ;;  %v1037_v48 = vadd.f32 %v1029_v24, %v1467_v16 }
 0x501   :  { %1202 = vmatmul.msk.f32.gmra.mxu1 %vm508_vm3, %v1037_v48 }
 0x506   :  { %v1030_v49 = vld [vmem:[#allocation3 + $0x38] sm:$0xff] }
 0x507   :  { %v1038_v50 = vadd.f32 %v1030_v49, %v1455_v13 }
 0x509   :  { %1203 = vmatmul.msk.f32.gmra.mxu1 %vm508_vm3, %v1038_v50 }
 0x536   :  { %v1083_v31 = vpop.f32.mrf.mxu1 }
 0x537   :  { %v1084_v35 = vadd.f32 %v1295_v17, %v1083_v31 }
 0x556   :  { %v1086_v61 = vpop.f32.mrf.mxu1 }
 0x557   :  { %v1087_v52 = vadd.f32 %v1295_v17, %v1086_v61 }
 0x559   :  { %1108 = vrot.lane.b32.xlu2 %v1087_v52, %s1343_s27 }
 0x55e   :  { %v1089_v54 = vpop.f32.mrf.mxu1 }
 0x55f   :  { %v1090_v53 = vadd.f32 %v1295_v17, %v1089_v54 }
 0x561   :  { %1112 = vrot.lane.b32.xlu0 %v1090_v53, %s1346_s29 }
 0x566   :  { %v1092_v16 = vpop.f32.mrf.mxu1 }
 0x567   :  { %v1093_v63 = vadd.f32 %v1295_v17, %v1092_v16 }
 0x56e   :  { %v1095_v59 = vpop.f32.mrf.mxu1 }
 0x56f   :  { %v1096_v57 = vadd.f32 %v1295_v17, %v1095_v59 }
 0x576   :  { %v1098_v62 = vpop.f32.mrf.mxu1 }
 0x577   :  { %v1099_v47 = vadd.f32 %v1295_v17, %v1098_v62 }
 0x579   :  { %1120 = vrot.lane.b32.xlu1 %v1099_v47, %s1343_s27  ;;  %s1145_s27 = sshll.u32 %s1359_s5, 4  ;;  %s1146_s27 = int_to_ptr.vmem [resolvable:$true] %s1145_s27 }
 0x57e   :  { %v1101_v13 = vpop.f32.mrf.mxu1 }
 0x57f   :  { %v1102_v34 = vadd.f32 %v1295_v17, %v1101_v13 }
 0x581   :  { %1116 = vrot.lane.b32.xlu1 %v1093_v63, %s1345_s28  ;;  %1124 = vrot.lane.b32.xlu2 %v1102_v34, %s1346_s29 }
 0x586   :  { %v1104_v7 = vpop.f32.mrf.mxu1 }
 0x587   :  { %v1105_v37 = vadd.f32 %v1295_v17, %v1104_v7 }
 0x589   :  { %1128 = vrot.lane.b32.xlu0 %v1105_v37, %s1345_s28 }
 0x5b3   :  { %v1109_v12 = vpop.permute.xlu2 %1108 }
 0x5b4   :  { %v1131_v40 = vsel %vm508_vm3, %v1084_v35, %v1109_v12 }
 0x5d3   :  { %v1113_v39 = vpop.permute.xlu0 %1112 }
 0x5d4   :  { %v1132_v55 = vsel %vm624_vm9, %v1131_v40, %v1113_v39 }
 0x5db   :  { %v1125_v11 = vpop.permute.xlu2 %1124 }
 0x5eb   :  { %v1121_v9 = vpop.permute.xlu1 %1120 }
 0x5ec   :  { %v1135_v2 = vsel %vm508_vm3, %v1096_v57, %v1121_v9 }
 0x5ed   :  { %v1136_v1 = vsel %vm624_vm9, %v1135_v2, %v1125_v11 }
 0x5f3   :  { %v1117_v45 = vpop.permute.xlu1 %1116 }
 0x5f4   :  { %v1134_v29 = vsel %vm1133_vm4, %v1132_v55, %v1117_v45 }
 0x5f5   :  { %1138 = vst [vmem:[#allocation4] sm:$0xff] %v1134_v29 }
 0x5fb   :  { %v1129_v51 = vpop.permute.xlu0 %1128 }
 0x5fc   :  { %v1137_v0 = vsel %vm1133_vm4, %v1136_v1, %v1129_v51 }
 0x5fd   :  { %1139 = vst [vmem:[#allocation4 + $0x8] sm:$0xff] %v1137_v0 }
 0x5fe   :  { %1150 = dma.vmem_to_hbm [thread:$0]  %s1146_s27, 256, %s1148_s24, [#allocation5]  }
 0x5ff   :  { %1338 = dma.done.wait [#allocation5], 256  }
 0x600   :  { %1339 = vsyncadd [#allocation5], 4294967040 }
 0x601   :  { %1155 = vsyncpa [#allocation5], 1 }

</bundles_post_ra>
